<compile_context>
chip_gen: v5e
topology: v5e:2x2
jax: 0.10.0
libtpu: 0.0.40
codegen_flags: <defaults>
</compile_context>

<pallas_src>
import jax
import jax.numpy as jnp
from jax.experimental import pallas as pl
from jax.experimental.pallas import tpu as pltpu

EPS = 1e-5  # torch.nn.BatchNorm1d default


def _round_up(a, m):
    return -(-a // m) * m


def _vmem_budget_bytes():
    """Generation-aware VMEM budget: ~0.75 x physical capacity, conservative fallback."""
    cap = None
    get_info = getattr(pltpu, "get_tpu_info", None)
    if get_info is not None:
        try:
            cap = getattr(get_info(), "vmem_capacity_bytes", None)
        except Exception:
            cap = None
    if not cap:
        cap = 64 << 20  # conservative: v7x physical VMEM per TensorCore
    return int(0.75 * cap)


def init_params(key, input_dim, layers=(128, 64, 32)):
    """torch-default-like init: Linear ~ U(+-1/sqrt(fan_in)); BN weight=1, bias=0."""
    dims = (input_dim,) + tuple(layers)
    keys = jax.random.split(key, 2 * (len(layers) + 1))
    ki = 0
    weights, bias, gamma, beta = [], [], [], []
    for i, out_dim in enumerate(layers):
        bound = float(dims[i]) ** -0.5
        weights.append(jax.random.uniform(keys[ki], (dims[i], out_dim), jnp.float32, -bound, bound)); ki += 1
        bias.append(jax.random.uniform(keys[ki], (out_dim,), jnp.float32, -bound, bound)); ki += 1
        gamma.append(jnp.ones((out_dim,), jnp.float32))
        beta.append(jnp.zeros((out_dim,), jnp.float32))
    bound = float(dims[-1]) ** -0.5
    w_out = jax.random.uniform(keys[ki], (dims[-1],), jnp.float32, -bound, bound); ki += 1
    b_out = jax.random.uniform(keys[ki], (), jnp.float32, -bound, bound)
    return dict(input_dim=input_dim, widths=tuple(layers), weights=weights, bias=bias,
                gamma=gamma, beta=beta, w_out=w_out, b_out=b_out)


def pack_params(params, matmul_dtype=jnp.bfloat16):
    """Pack parameters once, reuse across calls.

    w_slab: ONE lane-aligned (rows, 128) slab holding all hidden Linear weights (cast to
            matmul_dtype; bf16 halves the weight DMA and feeds the v6e/v7x MXU fast path).
    vecs:   ONE (rows, 128) f32 buffer; per hidden layer i, rows 3i..3i+2 hold
            (linear bias, bn gamma, bn beta)[:width_i]; then the final weight row + bias.
    Both use constant index maps in the kernel, so they are DMA'd once and stay VMEM-resident.
    """
    widths = tuple(params["widths"])
    n = len(widths)
    in_dims = (params["input_dim"],) + widths[:-1]
    lanes = _round_up(max(max(widths), 128), 128)

    offs, off = [], 0
    for d in in_dims:
        offs.append(off)
        off += _round_up(d, 16)          # 16-row alignment suits both f32 and bf16 sublanes
    w_slab = jnp.zeros((_round_up(off, 16), lanes), jnp.float32)
    for i, w in enumerate(params["weights"]):
        w_slab = w_slab.at[offs[i]:offs[i] + in_dims[i], :widths[i]].set(w)

    vecs = jnp.zeros((_round_up(3 * n + 2, 8), lanes), jnp.float32)
    for i, wd in enumerate(widths):
        vecs = vecs.at[3 * i + 0, :wd].set(params["bias"][i])
        vecs = vecs.at[3 * i + 1, :wd].set(params["gamma"][i])
        vecs = vecs.at[3 * i + 2, :wd].set(params["beta"][i])
    vecs = vecs.at[3 * n, :widths[-1]].set(params["w_out"])
    vecs = vecs.at[3 * n + 1, 0].set(params["b_out"])
    return dict(w_slab=w_slab.astype(matmul_dtype), vecs=vecs, widths=widths,
                in_dim=int(params["input_dim"]), w_offs=tuple(offs))


def _make_kernel(widths, in_dims, w_offs, B, tile_b, n_tiles,
                 single_pass, stats_on_mxu, ragged):
    n_layers = len(widths)
    inv_b = 1.0 / float(B)

    def kernel(x_ref, w_ref, v_ref, o_ref, stats_ref, ss_ref):
        p = pl.program_id(0)   # phase: which layer's stats are being accumulated
        t = pl.program_id(1)   # batch tile

        if not single_pass:
            @pl.when((p == 0) & (t == 0))
            def _init():
                stats_ref[...] = jnp.zeros_like(stats_ref)
                ss_ref[...] = jnp.zeros_like(ss_ref)

        V = v_ref[...]  # (rows, 128) f32: biases, BN gammas/betas, final weight row + bias

        if ragged:
            rows_valid = jnp.minimum(B - t * tile_b, tile_b)
            row_mask = jax.lax.broadcasted_iota(jnp.int32, (tile_b, 1), 0) < rows_valid

        def col_sums(a):
            """Column sum and sum-of-squares over the tile's rows -> (1, width) each."""
            am = jnp.where(row_mask, a, 0.0) if ragged else a
            if stats_on_mxu:
                # Offload the long add chains to the (otherwise idle) MXU.
                ones_row = jnp.ones((1, tile_b), jnp.float32)
                s = jnp.dot(ones_row, am, preferred_element_type=jnp.float32)
                s2 = jnp.dot(ones_row, am * am, preferred_element_type=jnp.float32)
            else:
                s = jnp.sum(am, axis=0, keepdims=True)
                s2 = jnp.sum(am * am, axis=0, keepdims=True)
            return s, s2

        def bn_scale_shift(s, s2, gamma, beta):
            # TODO(synk): E[x^2]-mu^2 in f32 can cancel for large-magnitude activations; a
            # centered extra pass (or Welford) would track torch even more tightly.
            mu = s * inv_b
            var = jnp.maximum(s2 * inv_b - mu * mu, 0.0)
            scale = gamma * jax.lax.rsqrt(var + EPS)
            return scale, beta - mu * scale

        h = x_ref[...]   # consumed in its incoming dtype (bf16 x skips the f32 upcast)
        for i in range(n_layers):
            wd = widths[i]
            wi = w_ref[w_offs[i]:w_offs[i] + in_dims[i], :wd]      # static slice of the slab
            r = 3 * i
            h = jnp.dot(h.astype(wi.dtype), wi, preferred_element_type=jnp.float32)
            h = h + V[r:r + 1, :wd]          # Linear bias
            h = jnp.maximum(h, 0.0)          # ReLU
            gamma = V[r + 1:r + 2, :wd]
            beta = V[r + 2:r + 3, :wd]
            if single_pass:
                # Whole batch is in this single tile: stats are exact right now.
                scale, shift = bn_scale_shift(*col_sums(h), gamma, beta)
            else:
                # Phase i accumulates layer i's stats; layers < i already have exact
                # scale/shift from earlier phases, so this tile's pre-BN h is exact.
                @pl.when(p == i)
                def _accumulate(h=h, i=i, wd=wd):
                    s, s2 = col_sums(h)
                    stats_ref[2 * i:2 * i + 1, :wd] += s
                    stats_ref[2 * i + 1:2 * i + 2, :wd] += s2

                @pl.when((p == i) & (t == n_tiles - 1))
                def _finalize(i=i, wd=wd, gamma=gamma, beta=beta):
                    sc, sh = bn_scale_shift(stats_ref[2 * i:2 * i + 1, :wd],
                                            stats_ref[2 * i + 1:2 * i + 2, :wd], gamma, beta)
                    ss_ref[2 * i:2 * i + 1, :wd] = sc
                    ss_ref[2 * i + 1:2 * i + 2, :wd] = sh

                scale = ss_ref[2 * i:2 * i + 1, :wd]
                shift = ss_ref[2 * i + 1:2 * i + 2, :wd]
            # For layers >= current phase, scale/shift are not final yet; those results are
            # recomputed in later phases, so applying them here is harmless (and cheap).
            h = h * scale + shift            # fused BN: 2 VPU ops / element

        def _write_out(h=h):
            # Final Linear(last, 1): VPU multiply + XLU lane reduce (keeps the MXU free).
            w_out = V[3 * n_layers:3 * n_layers + 1, :widths[-1]]
            b_out = V[3 * n_layers + 1:3 * n_layers + 2, 0:1]
            o_ref[...] = jnp.sum(h * w_out, axis=-1, keepdims=True) + b_out

        if single_pass:
            _write_out()
        else:
            pl.when(p == n_layers)(_write_out)

    return kernel


def neural_net_forward(x, packed, *, block_rows=512, force_tiled=False):
    """x: (B, input_dim) -> (B,) f32, matching NeuralNet.forward (train-mode BatchNorm)."""
    w_slab, vecs = packed["w_slab"], packed["vecs"]
    widths, in_dim, w_offs = packed["widths"], packed["in_dim"], packed["w_offs"]
    n_layers = len(widths)
    in_dims = (in_dim,) + tuple(widths[:-1])
    B, D = x.shape
    assert D == in_dim
    lanes = vecs.shape[1]

    budget = _vmem_budget_bytes()
    x_isz = jnp.dtype(x.dtype).itemsize
    w_isz = jnp.dtype(w_slab.dtype).itemsize

    def tile_vmem_bytes(rows):
        # Double-buffered tiles + resident params + coexisting f32 temporaries
        # (h, h*h, cast matmul operand, matmul result) + scratch + margin.
        return (2 * rows * D * x_isz + 2 * rows * 4
                + 2 * w_slab.size * w_isz + 2 * vecs.size * 4
                + 4 * rows * lanes * 4
                + 4 * 8 * lanes * 4 + (1 << 20))

    B_pad8 = _round_up(B, 8)
    if not force_tiled and tile_vmem_bytes(B_pad8) <= budget // 2:
        tile_b, n_tiles = B_pad8, 1                       # whole-batch-resident, single pass
    else:
        tile_b = min(_round_up(block_rows, 8), B_pad8)
        while tile_b > 8 and tile_vmem_bytes(tile_b) > budget // 2:
            tile_b = _round_up(tile_b // 2, 8)
        n_tiles = -(-B // tile_b)
    single_pass = n_tiles == 1
    n_phases = 1 if single_pass else n_layers + 1
    B_pad = n_tiles * tile_b
    ragged = B_pad != B
    stats_on_mxu = tile_b >= 256

    x_p = jnp.pad(x, ((0, B_pad - B), (0, 0))) if ragged else x

    stat_rows = _round_up(2 * n_layers, 8)
    kernel = _make_kernel(widths, in_dims, w_offs, B, tile_b, n_tiles,
                          single_pass, stats_on_mxu, ragged)
    grid_spec = pltpu.PrefetchScalarGridSpec(
        num_scalar_prefetch=0,
        grid=(n_phases, n_tiles),                          # tiles iterate fastest
        in_specs=[
            pl.BlockSpec((tile_b, D), lambda p, t: (t, 0)),    # batch tile: pipelined
            pl.BlockSpec(w_slab.shape, lambda p, t: (0, 0)),   # weight slab: fetched once
            pl.BlockSpec(vecs.shape, lambda p, t: (0, 0)),     # small vectors: fetched once
        ],
        out_specs=pl.BlockSpec((tile_b, 1), lambda p, t: (t, 0)),
        scratch_shapes=[pltpu.VMEM((stat_rows, lanes), jnp.float32),   # per-layer sum / sumsq
                        pltpu.VMEM((stat_rows, lanes), jnp.float32)])  # per-layer scale / shift

    vmem_limit = int(min(budget, max(2 * tile_vmem_bytes(tile_b), 32 << 20)))
    out = pl.pallas_call(
        kernel,
        out_shape=jax.ShapeDtypeStruct((B_pad, 1), jnp.float32),
        grid_spec=grid_spec,
        compiler_params=pltpu.CompilerParams(
            dimension_semantics=("arbitrary", "arbitrary"),
            vmem_limit_bytes=vmem_limit),
    )(x_p, w_slab, vecs)
    return out[:B, 0]  # .squeeze(1)


def reference_forward(x, params, matmul_dtype=jnp.float32):
    """Pure-JAX reference of the same math (mirrors the kernel's matmul dtype)."""
    h = x
    for i in range(len(params["widths"])):
        w = params["weights"][i].astype(matmul_dtype)
        h = jnp.dot(h.astype(matmul_dtype), w, preferred_element_type=jnp.float32)
        h = h + params["bias"][i]
        h = jnp.maximum(h, 0.0)
        mu = jnp.mean(h, axis=0, keepdims=True)
        var = jnp.mean((h - mu) ** 2, axis=0, keepdims=True)
        h = (h - mu) * jax.lax.rsqrt(var + EPS) * params["gamma"][i] + params["beta"][i]
    return h @ params["w_out"] + params["b_out"]


if __name__ == "__main__":
    key = jax.random.PRNGKey(0)
    k_x, k_p = jax.random.split(key)
    input_dim = 16
    layers = (128, 64, 32)
    params = init_params(k_p, input_dim, layers)

    B = 256
    x = jax.random.normal(k_x, (B, input_dim), jnp.float32)
    packed_f32 = pack_params(params, matmul_dtype=jnp.float32)
    y_ref = reference_forward(x, params, jnp.float32)

    # 1) Whole-batch-resident single-pass path (small B) with MXU-based BN column sums.
    y1 = jax.block_until_ready(neural_net_forward(x, packed_f32))
    assert y1.shape == (B,)
    assert jnp.allclose(y1, y_ref, atol=5e-3, rtol=5e-3), float(jnp.max(jnp.abs(y1 - y_ref)))

    # 2) Batch-tiled multi-phase path (2 tiles x 4 phases): exact full-batch BN across tiles.
    y2 = jax.block_until_ready(neural_net_forward(x, packed_f32, block_rows=128, force_tiled=True))
    assert y2.shape == (B,)
    assert jnp.allclose(y2, y_ref, atol=2e-3, rtol=2e-3), float(jnp.max(jnp.abs(y2 - y_ref)))

    # 3) Ragged batch (B not a multiple of the tile) + bf16 MXU weights, f32 accumulation/BN.
    B3 = 200
    x3 = x[:B3]
    packed_bf16 = pack_params(params, matmul_dtype=jnp.bfloat16)
    y3 = jax.block_until_ready(neural_net_forward(x3, packed_bf16, block_rows=128, force_tiled=True))
    y3_ref = reference_forward(x3, params, jnp.bfloat16)
    assert y3.shape == (B3,)
    assert jnp.allclose(y3, y3_ref, atol=5e-3, rtol=5e-3), float(jnp.max(jnp.abs(y3 - y3_ref)))

    print("KERNEL_OK")
</pallas_src>

<mosaic_0001>
module attributes {stable_mosaic.version = 11 : i64} {
  func.func @kernel(%arg0: i32, %arg1: i32, %arg2: memref<256x16xf32, #tpu.memory_space<vmem>>, %arg3: memref<208x128xf32, #tpu.memory_space<vmem>>, %arg4: memref<16x128xf32, #tpu.memory_space<vmem>>, %arg5: memref<256x1xf32, #tpu.memory_space<vmem>>, %arg6: memref<8x128xf32, #tpu.memory_space<vmem>>, %arg7: memref<8x128xf32, #tpu.memory_space<vmem>>) attributes {dimension_semantics = [#tpu.dimension_semantics<arbitrary>, #tpu.dimension_semantics<arbitrary>], iteration_bounds = array<i64: 1, 1>, scalar_prefetch = 0 : i64, scratch_operands = 2 : i64, tpu.core_type = #tpu.core_type<tc>, window_params = [{transform_indices = @transform_0, window_bounds = array<i64: 256, 16>}, {pipeline_mode = #tpu.pipeline_mode<synchronous>, transform_indices = @transform_1, window_bounds = array<i64: 208, 128>}, {pipeline_mode = #tpu.pipeline_mode<synchronous>, transform_indices = @transform_2, window_bounds = array<i64: 16, 128>}, {transform_indices = @transform_3, window_bounds = array<i64: 256, 1>}]} {
    %c0 = arith.constant 0 : index
    %c0_0 = arith.constant 0 : index
    %0 = vector.load %arg4[%c0, %c0_0] : memref<16x128xf32, #tpu.memory_space<vmem>>, vector<16x128xf32>
    %c0_1 = arith.constant 0 : index
    %c0_2 = arith.constant 0 : index
    %1 = vector.load %arg2[%c0_1, %c0_2] : memref<256x16xf32, #tpu.memory_space<vmem>>, vector<256x16xf32>
    %c0_3 = arith.constant 0 : index
    %c0_4 = arith.constant 0 : index
    %2 = vector.load %arg3[%c0_3, %c0_4] : memref<208x128xf32, #tpu.memory_space<vmem>>, vector<16x128xf32>
    %cst = arith.constant dense<0.000000e+00> : vector<256x128xf32>
    %3 = tpu.matmul %1, %2, %cst {dimension_numbers = #tpu.dot_dimension_numbers<[1], [0], [0], [1], [0, 0, 1, 1], [], []>} : vector<256x16xf32>, vector<16x128xf32>, vector<256x128xf32> -> vector<256x128xf32>
    %4 = vector.extract_strided_slice %0 {offsets = [0, 0], sizes = [1, 128], strides = [1, 1]} : vector<16x128xf32> to vector<1x128xf32>
    %5 = vector.broadcast %4 : vector<1x128xf32> to vector<256x128xf32>
    %6 = arith.addf %3, %5 : vector<256x128xf32>
    %cst_5 = arith.constant 0.000000e+00 : f32
    %7 = vector.broadcast %cst_5 : f32 to vector<256x128xf32>
    %8 = arith.maximumf %6, %7 : vector<256x128xf32>
    %9 = vector.extract_strided_slice %0 {offsets = [1, 0], sizes = [1, 128], strides = [1, 1]} : vector<16x128xf32> to vector<1x128xf32>
    %10 = vector.extract_strided_slice %0 {offsets = [2, 0], sizes = [1, 128], strides = [1, 1]} : vector<16x128xf32> to vector<1x128xf32>
    %cst_6 = arith.constant 1.000000e+00 : f32
    %11 = vector.broadcast %cst_6 : f32 to vector<1x256xf32>
    %cst_7 = arith.constant dense<0.000000e+00> : vector<1x128xf32>
    %12 = tpu.matmul %11, %8, %cst_7 {dimension_numbers = #tpu.dot_dimension_numbers<[1], [0], [0], [1], [0, 0, 1, 1], [], []>} : vector<1x256xf32>, vector<256x128xf32>, vector<1x128xf32> -> vector<1x128xf32>
    %13 = arith.mulf %8, %8 : vector<256x128xf32>
    %cst_8 = arith.constant dense<0.000000e+00> : vector<1x128xf32>
    %14 = tpu.matmul %11, %13, %cst_8 {dimension_numbers = #tpu.dot_dimension_numbers<[1], [0], [0], [1], [0, 0, 1, 1], [], []>} : vector<1x256xf32>, vector<256x128xf32>, vector<1x128xf32> -> vector<1x128xf32>
    %cst_9 = arith.constant 3.906250e-03 : f32
    %15 = vector.broadcast %cst_9 : f32 to vector<1x128xf32>
    %16 = arith.mulf %12, %15 : vector<1x128xf32>
    %cst_10 = arith.constant 3.906250e-03 : f32
    %17 = vector.broadcast %cst_10 : f32 to vector<1x128xf32>
    %18 = arith.mulf %14, %17 : vector<1x128xf32>
    %19 = arith.mulf %16, %16 : vector<1x128xf32>
    %20 = arith.subf %18, %19 : vector<1x128xf32>
    %cst_11 = arith.constant 0.000000e+00 : f32
    %21 = vector.broadcast %cst_11 : f32 to vector<1x128xf32>
    %22 = arith.maximumf %20, %21 : vector<1x128xf32>
    %cst_12 = arith.constant 9.99999974E-6 : f32
    %23 = vector.broadcast %cst_12 : f32 to vector<1x128xf32>
    %24 = arith.addf %22, %23 : vector<1x128xf32>
    %25 = math.rsqrt %24 : vector<1x128xf32>
    %26 = arith.mulf %9, %25 : vector<1x128xf32>
    %27 = arith.mulf %16, %26 : vector<1x128xf32>
    %28 = arith.subf %10, %27 : vector<1x128xf32>
    %29 = vector.broadcast %26 : vector<1x128xf32> to vector<256x128xf32>
    %30 = arith.mulf %8, %29 : vector<256x128xf32>
    %31 = vector.broadcast %28 : vector<1x128xf32> to vector<256x128xf32>
    %32 = arith.addf %30, %31 : vector<256x128xf32>
    %c16 = arith.constant 16 : index
    %c0_13 = arith.constant 0 : index
    %33 = vector.load %arg3[%c16, %c0_13] : memref<208x128xf32, #tpu.memory_space<vmem>>, vector<128x64xf32>
    %cst_14 = arith.constant dense<0.000000e+00> : vector<256x64xf32>
    %34 = tpu.matmul %32, %33, %cst_14 {dimension_numbers = #tpu.dot_dimension_numbers<[1], [0], [0], [1], [0, 0, 1, 1], [], []>} : vector<256x128xf32>, vector<128x64xf32>, vector<256x64xf32> -> vector<256x64xf32>
    %35 = vector.extract_strided_slice %0 {offsets = [3, 0], sizes = [1, 64], strides = [1, 1]} : vector<16x128xf32> to vector<1x64xf32>
    %36 = vector.broadcast %35 : vector<1x64xf32> to vector<256x64xf32>
    %37 = arith.addf %34, %36 : vector<256x64xf32>
    %cst_15 = arith.constant 0.000000e+00 : f32
    %38 = vector.broadcast %cst_15 : f32 to vector<256x64xf32>
    %39 = arith.maximumf %37, %38 : vector<256x64xf32>
    %40 = vector.extract_strided_slice %0 {offsets = [4, 0], sizes = [1, 64], strides = [1, 1]} : vector<16x128xf32> to vector<1x64xf32>
    %41 = vector.extract_strided_slice %0 {offsets = [5, 0], sizes = [1, 64], strides = [1, 1]} : vector<16x128xf32> to vector<1x64xf32>
    %cst_16 = arith.constant 1.000000e+00 : f32
    %42 = vector.broadcast %cst_16 : f32 to vector<1x256xf32>
    %cst_17 = arith.constant dense<0.000000e+00> : vector<1x64xf32>
    %43 = tpu.matmul %42, %39, %cst_17 {dimension_numbers = #tpu.dot_dimension_numbers<[1], [0], [0], [1], [0, 0, 1, 1], [], []>} : vector<1x256xf32>, vector<256x64xf32>, vector<1x64xf32> -> vector<1x64xf32>
    %44 = arith.mulf %39, %39 : vector<256x64xf32>
    %cst_18 = arith.constant dense<0.000000e+00> : vector<1x64xf32>
    %45 = tpu.matmul %42, %44, %cst_18 {dimension_numbers = #tpu.dot_dimension_numbers<[1], [0], [0], [1], [0, 0, 1, 1], [], []>} : vector<1x256xf32>, vector<256x64xf32>, vector<1x64xf32> -> vector<1x64xf32>
    %cst_19 = arith.constant 3.906250e-03 : f32
    %46 = vector.broadcast %cst_19 : f32 to vector<1x64xf32>
    %47 = arith.mulf %43, %46 : vector<1x64xf32>
    %cst_20 = arith.constant 3.906250e-03 : f32
    %48 = vector.broadcast %cst_20 : f32 to vector<1x64xf32>
    %49 = arith.mulf %45, %48 : vector<1x64xf32>
    %50 = arith.mulf %47, %47 : vector<1x64xf32>
    %51 = arith.subf %49, %50 : vector<1x64xf32>
    %cst_21 = arith.constant 0.000000e+00 : f32
    %52 = vector.broadcast %cst_21 : f32 to vector<1x64xf32>
    %53 = arith.maximumf %51, %52 : vector<1x64xf32>
    %cst_22 = arith.constant 9.99999974E-6 : f32
    %54 = vector.broadcast %cst_22 : f32 to vector<1x64xf32>
    %55 = arith.addf %53, %54 : vector<1x64xf32>
    %56 = math.rsqrt %55 : vector<1x64xf32>
    %57 = arith.mulf %40, %56 : vector<1x64xf32>
    %58 = arith.mulf %47, %57 : vector<1x64xf32>
    %59 = arith.subf %41, %58 : vector<1x64xf32>
    %60 = vector.broadcast %57 : vector<1x64xf32> to vector<256x64xf32>
    %61 = arith.mulf %39, %60 : vector<256x64xf32>
    %62 = vector.broadcast %59 : vector<1x64xf32> to vector<256x64xf32>
    %63 = arith.addf %61, %62 : vector<256x64xf32>
    %c144 = arith.constant 144 : index
    %c0_23 = arith.constant 0 : index
    %64 = vector.load %arg3[%c144, %c0_23] : memref<208x128xf32, #tpu.memory_space<vmem>>, vector<64x32xf32>
    %cst_24 = arith.constant dense<0.000000e+00> : vector<256x32xf32>
    %65 = tpu.matmul %63, %64, %cst_24 {dimension_numbers = #tpu.dot_dimension_numbers<[1], [0], [0], [1], [0, 0, 1, 1], [], []>} : vector<256x64xf32>, vector<64x32xf32>, vector<256x32xf32> -> vector<256x32xf32>
    %66 = vector.extract_strided_slice %0 {offsets = [6, 0], sizes = [1, 32], strides = [1, 1]} : vector<16x128xf32> to vector<1x32xf32>
    %67 = vector.broadcast %66 : vector<1x32xf32> to vector<256x32xf32>
    %68 = arith.addf %65, %67 : vector<256x32xf32>
    %cst_25 = arith.constant 0.000000e+00 : f32
    %69 = vector.broadcast %cst_25 : f32 to vector<256x32xf32>
    %70 = arith.maximumf %68, %69 : vector<256x32xf32>
    %71 = vector.extract_strided_slice %0 {offsets = [7, 0], sizes = [1, 32], strides = [1, 1]} : vector<16x128xf32> to vector<1x32xf32>
    %72 = vector.extract_strided_slice %0 {offsets = [8, 0], sizes = [1, 32], strides = [1, 1]} : vector<16x128xf32> to vector<1x32xf32>
    %cst_26 = arith.constant 1.000000e+00 : f32
    %73 = vector.broadcast %cst_26 : f32 to vector<1x256xf32>
    %cst_27 = arith.constant dense<0.000000e+00> : vector<1x32xf32>
    %74 = tpu.matmul %73, %70, %cst_27 {dimension_numbers = #tpu.dot_dimension_numbers<[1], [0], [0], [1], [0, 0, 1, 1], [], []>} : vector<1x256xf32>, vector<256x32xf32>, vector<1x32xf32> -> vector<1x32xf32>
    %75 = arith.mulf %70, %70 : vector<256x32xf32>
    %cst_28 = arith.constant dense<0.000000e+00> : vector<1x32xf32>
    %76 = tpu.matmul %73, %75, %cst_28 {dimension_numbers = #tpu.dot_dimension_numbers<[1], [0], [0], [1], [0, 0, 1, 1], [], []>} : vector<1x256xf32>, vector<256x32xf32>, vector<1x32xf32> -> vector<1x32xf32>
    %cst_29 = arith.constant 3.906250e-03 : f32
    %77 = vector.broadcast %cst_29 : f32 to vector<1x32xf32>
    %78 = arith.mulf %74, %77 : vector<1x32xf32>
    %cst_30 = arith.constant 3.906250e-03 : f32
    %79 = vector.broadcast %cst_30 : f32 to vector<1x32xf32>
    %80 = arith.mulf %76, %79 : vector<1x32xf32>
    %81 = arith.mulf %78, %78 : vector<1x32xf32>
    %82 = arith.subf %80, %81 : vector<1x32xf32>
    %cst_31 = arith.constant 0.000000e+00 : f32
    %83 = vector.broadcast %cst_31 : f32 to vector<1x32xf32>
    %84 = arith.maximumf %82, %83 : vector<1x32xf32>
    %cst_32 = arith.constant 9.99999974E-6 : f32
    %85 = vector.broadcast %cst_32 : f32 to vector<1x32xf32>
    %86 = arith.addf %84, %85 : vector<1x32xf32>
    %87 = math.rsqrt %86 : vector<1x32xf32>
    %88 = arith.mulf %71, %87 : vector<1x32xf32>
    %89 = arith.mulf %78, %88 : vector<1x32xf32>
    %90 = arith.subf %72, %89 : vector<1x32xf32>
    %91 = vector.broadcast %88 : vector<1x32xf32> to vector<256x32xf32>
    %92 = arith.mulf %70, %91 : vector<256x32xf32>
    %93 = vector.broadcast %90 : vector<1x32xf32> to vector<256x32xf32>
    %94 = arith.addf %92, %93 : vector<256x32xf32>
    %95 = vector.extract_strided_slice %0 {offsets = [9, 0], sizes = [1, 32], strides = [1, 1]} : vector<16x128xf32> to vector<1x32xf32>
    %96 = vector.extract_strided_slice %0 {offsets = [10, 0], sizes = [1, 1], strides = [1, 1]} : vector<16x128xf32> to vector<1x1xf32>
    %97 = vector.broadcast %95 : vector<1x32xf32> to vector<256x32xf32>
    %98 = arith.mulf %94, %97 : vector<256x32xf32>
    %cst_33 = arith.constant dense<0.000000e+00> : vector<256xf32>
    %99 = vector.multi_reduction <add>, %98, %cst_33 [1] : vector<256x32xf32> to vector<256xf32>
    %100 = vector.shape_cast %99 : vector<256xf32> to vector<256x1xf32>
    %101 = vector.broadcast %96 : vector<1x1xf32> to vector<256x1xf32>
    %102 = arith.addf %100, %101 : vector<256x1xf32>
    %c0_34 = arith.constant 0 : index
    %c0_35 = arith.constant 0 : index
    %103 = vector.load %arg5[%c0_34, %c0_35] : memref<256x1xf32, #tpu.memory_space<vmem>>, vector<256x1xf32>
    tpu.vector_store %arg5[%c0_34, %c0_35], %102 {strides = array<i32>} : memref<256x1xf32, #tpu.memory_space<vmem>>, vector<256x1xf32>,
    return
  }
  func.func @transform_0(%arg0: i32, %arg1: i32) -> (i32, i32) {
    %c0_i32 = arith.constant 0 : i32
    %c0_i32_0 = arith.constant 0 : i32
    return %arg1, %c0_i32 : i32, i32
  }
  func.func @transform_1(%arg0: i32, %arg1: i32) -> (i32, i32) {
    %c0_i32 = arith.constant 0 : i32
    %c0_i32_0 = arith.constant 0 : i32
    %c0_i32_1 = arith.constant 0 : i32
    return %c0_i32, %c0_i32_0 : i32, i32
  }
  func.func @transform_2(%arg0: i32, %arg1: i32) -> (i32, i32) {
    %c0_i32 = arith.constant 0 : i32
    %c0_i32_0 = arith.constant 0 : i32
    %c0_i32_1 = arith.constant 0 : i32
    return %c0_i32, %c0_i32_0 : i32, i32
  }
  func.func @transform_3(%arg0: i32, %arg1: i32) -> (i32, i32) {
    %c0_i32 = arith.constant 0 : i32
    %c0_i32_0 = arith.constant 0 : i32
    return %arg1, %c0_i32 : i32, i32
  }
}

</mosaic_0001>

<bundles_post_ra>
// kernel: tpu_custom_call.1
= control target key start
LH: loop header
LB: loop body
LE: loop exit
PB: predicated region body
PF: predicated region fallthrough
CT: control target
= control target key end

     0   :  { %vm51_vm0 = vcmask 130048   ;;  %vm876_vm7 = vcmask 523264   ;;  %vm1354_vm11 = vcmask 261120   ;;  %vm1484_vm12 = vcmask 7168   ;;  %s3072_s1 = inlined_call_operand.vmem [shape: f32[208,128], index: 1, kind: input, shape index: {}]   ;;  %s3073_s0 = inlined_call_operand.vmem [shape: f32[256,16], index: 0, kind: input, shape index: {}]   ;;  %s3074_s2 = inlined_call_operand.vmem [shape: f32[16,128], index: 2, kind: input, shape index: {}]   ;;  %s3075_s3 = inlined_call_operand.vmem [shape: f32[256,1], index: 3, kind: output, shape index: {}]  }
   0x1   :  { %v49_v0 = vld [vmem:[%s3072_s1 + $0x8] sm:$0xff]  ;;  %v48_v1 = vld [vmem:[%s3072_s1] sm:$0xff]  ;;  %v18_v4 = vld [vmem:[%s3073_s0 + $0x10] sm:$0xff] }
   0x2   :  { %162 = vmatpush.msra.mxu0 %v49_v0  ;;  %v16_v2 = vld [vmem:[%s3073_s0] sm:$0xff]  ;;  %v17_v3 = vld [vmem:[%s3073_s0 + $0x8] sm:$0xff]  ;;  %v19_v5 = vld [vmem:[%s3073_s0 + $0x18] sm:$0xff] }
   0x3   :  { %v20_v6 = vld [vmem:[%s3073_s0 + $0x20] sm:$0xff]  ;;  %v21_v7 = vld [vmem:[%s3073_s0 + $0x28] sm:$0xff]  ;;  %v22_v8 = vld [vmem:[%s3073_s0 + $0x30] sm:$0xff] }
   0x4   :  { %163 = vmatpush.msra.mxu0 %v48_v1  ;;  %v23_v9 = vld [vmem:[%s3073_s0 + $0x38] sm:$0xff]  ;;  %v24_v10 = vld [vmem:[%s3073_s0 + $0x40] sm:$0xff]  ;;  %v25_v11 = vld [vmem:[%s3073_s0 + $0x48] sm:$0xff] }
   0x5   :  { %1521 = vmatmul.msk.f32.vlgmr.msra.gmra.mxu0 %vm51_vm0, %v16_v2  ;;  %v26_v12 = vld [vmem:[%s3073_s0 + $0x50] sm:$0xff]  ;;  %v27_v13 = vld [vmem:[%s3073_s0 + $0x58] sm:$0xff]  ;;  %v28_v14 = vld [vmem:[%s3073_s0 + $0x60] sm:$0xff] }
   0x6   :  { %v29_v15 = vld [vmem:[%s3073_s0 + $0x68] sm:$0xff]  ;;  %v30_v16 = vld [vmem:[%s3073_s0 + $0x70] sm:$0xff]  ;;  %v31_v17 = vld [vmem:[%s3073_s0 + $0x78] sm:$0xff] }
   0x7   :  { %v32_v19 = vld [vmem:[%s3073_s0 + $0x80] sm:$0xff]  ;;  %v33_v21 = vld [vmem:[%s3073_s0 + $0x88] sm:$0xff]  ;;  %v34_v23 = vld [vmem:[%s3073_s0 + $0x90] sm:$0xff] }
   0x8   :  { %v35_v25 = vld [vmem:[%s3073_s0 + $0x98] sm:$0xff]  ;;  %v36_v27 = vld [vmem:[%s3073_s0 + $0xa0] sm:$0xff]  ;;  %v37_v29 = vld [vmem:[%s3073_s0 + $0xa8] sm:$0xff] }
   0x9   :  { %v38_v31 = vld [vmem:[%s3073_s0 + $0xb0] sm:$0xff]  ;;  %v39_v33 = vld [vmem:[%s3073_s0 + $0xb8] sm:$0xff]  ;;  %v40_v35 = vld [vmem:[%s3073_s0 + $0xc0] sm:$0xff] }
   0xa   :  { %v41_v37 = vld [vmem:[%s3073_s0 + $0xc8] sm:$0xff]  ;;  %v42_v39 = vld [vmem:[%s3073_s0 + $0xd0] sm:$0xff]  ;;  %v43_v41 = vld [vmem:[%s3073_s0 + $0xd8] sm:$0xff] }
   0xb   :  { %v44_v43 = vld [vmem:[%s3073_s0 + $0xe0] sm:$0xff]  ;;  %v45_v45 = vld [vmem:[%s3073_s0 + $0xe8] sm:$0xff]  ;;  %v46_v47 = vld [vmem:[%s3073_s0 + $0xf0] sm:$0xff] }
   0xc   :  { %v1776_v48 = vld [vmem:[%s3074_s2] sm:$0xff]  ;;  %v47_v52 = vld [vmem:[%s3073_s0 + $0xf8] sm:$0xff] }
   0xd   :  { %1522 = vmatmul.msk.f32.gmra.mxu0 %vm51_vm0, %v17_v3  ;;  %v1780_v49 = vperm.slane %v1776_v48, 0 }
  0x15   :  { %1523 = vmatmul.msk.f32.gmra.mxu0 %vm51_vm0, %v18_v4 }
  0x1d   :  { %1524 = vmatmul.msk.f32.gmra.mxu0 %vm51_vm0, %v19_v5 }
  0x25   :  { %1525 = vmatmul.msk.f32.gmra.mxu0 %vm51_vm0, %v20_v6 }
  0x2d   :  { %1526 = vmatmul.msk.f32.gmra.mxu0 %vm51_vm0, %v21_v7 }
  0x35   :  { %1527 = vmatmul.msk.f32.gmra.mxu0 %vm51_vm0, %v22_v8 }
  0x3d   :  { %1528 = vmatmul.msk.f32.gmra.mxu0 %vm51_vm0, %v23_v9 }
  0x45   :  { %1529 = vmatmul.msk.f32.gmra.mxu0 %vm51_vm0, %v24_v10 }
  0x4d   :  { %1530 = vmatmul.msk.f32.gmra.mxu0 %vm51_vm0, %v25_v11 }
  0x55   :  { %1531 = vmatmul.msk.f32.gmra.mxu0 %vm51_vm0, %v26_v12 }
  0x5d   :  { %1532 = vmatmul.msk.f32.gmra.mxu0 %vm51_vm0, %v27_v13 }
  0x65   :  { %1533 = vmatmul.msk.f32.gmra.mxu0 %vm51_vm0, %v28_v14 }
  0x6d   :  { %1534 = vmatmul.msk.f32.gmra.mxu0 %vm51_vm0, %v29_v15 }
  0x75   :  { %1535 = vmatmul.msk.f32.gmra.mxu0 %vm51_vm0, %v30_v16 }
  0x7d   :  { %1536 = vmatmul.msk.f32.gmra.mxu0 %vm51_vm0, %v31_v17 }
  0x82   :  { %v1700_v18 = vpop.f32.mrf.mxu0 }
  0x85   :  { %1537 = vmatmul.msk.f32.gmra.mxu0 %vm51_vm0, %v32_v19 }
  0x8a   :  { %v1706_v20 = vpop.f32.mrf.mxu0 }
  0x8d   :  { %1538 = vmatmul.msk.f32.gmra.mxu0 %vm51_vm0, %v33_v21 }
  0x92   :  { %v1712_v22 = vpop.f32.mrf.mxu0 }
  0x95   :  { %1539 = vmatmul.msk.f32.gmra.mxu0 %vm51_vm0, %v34_v23 }
  0x9a   :  { %v1718_v24 = vpop.f32.mrf.mxu0 }
  0x9b   :  { %v175_v23 = vadd.f32 %v1718_v24, %v1780_v49 }
  0x9d   :  { %1540 = vmatmul.msk.f32.gmra.mxu0 %vm51_vm0, %v35_v25 }
  0xa2   :  { %v1724_v26 = vpop.f32.mrf.mxu0 }
  0xa3   :  { %v178_v17 = vadd.f32 %v1724_v26, %v1780_v49  ;;  %v172_v26 = vadd.f32 %v1712_v22, %v1780_v49 }
  0xa5   :  { %1541 = vmatmul.msk.f32.gmra.mxu0 %vm51_vm0, %v36_v27 }
  0xaa   :  { %v1730_v28 = vpop.f32.mrf.mxu0 }
  0xab   :  { %v181_v14 = vadd.f32 %v1730_v28, %v1780_v49  ;;  %v1858_v28 = vmax.f32 %v178_v17, 0.0 }
  0xad   :  { %1542 = vmatmul.msk.f32.gmra.mxu0 %vm51_vm0, %v37_v29  ;;  %v1851_v25 = vmax.f32 %v181_v14, 0.0 }
  0xaf   :  { %v338_v22 = vmul.f32 %v1851_v25, %v1851_v25 }
  0xb2   :  { %v1736_v30 = vpop.f32.mrf.mxu0 }
  0xb3   :  { %v184_v10 = vadd.f32 %v1736_v30, %v1780_v49  ;;  %v169_v30 = vadd.f32 %v1706_v20, %v1780_v49 }
  0xb5   :  { %1543 = vmatmul.msk.f32.gmra.mxu0 %vm51_vm0, %v38_v31  ;;  %v1844_v19 = vmax.f32 %v184_v10, 0.0  ;;  %v1867_v31 = vmax.f32 %v175_v23, 0.0  ;;  %v1879_v20 = vmax.f32 %v169_v30, 0.0 }
  0xb7   :  { %v339_v29 = vmul.f32 %v1844_v19, %v1844_v19 }
  0xba   :  { %v186_v32 = vpop.f32.mrf.mxu0 }
  0xbb   :  { %v187_v7 = vadd.f32 %v186_v32, %v1780_v49  ;;  %v166_v32 = vadd.f32 %v1700_v18, %v1780_v49 }
  0xbd   :  { %1544 = vmatmul.msk.f32.gmra.mxu0 %vm51_vm0, %v39_v33  ;;  %v1837_v15 = vmax.f32 %v187_v7, 0.0  ;;  %v1874_v33 = vmax.f32 %v172_v26, 0.0 }
  0xbf   :  { %v340_v27 = vmul.f32 %v1837_v15, %v1837_v15  ;;  %v335_v18 = vmul.f32 %v1874_v33, %v1874_v33 }
  0xc2   :  { %v189_v34 = vpop.f32.mrf.mxu0 }
  0xc3   :  { %v190_v4 = vadd.f32 %v189_v34, %v1780_v49  ;;  %v337_v34 = vmul.f32 %v1858_v28, %v1858_v28 }
  0xc5   :  { %1545 = vmatmul.msk.f32.gmra.mxu0 %vm51_vm0, %v40_v35  ;;  %v1828_v11 = vmax.f32 %v190_v4, 0.0  ;;  %v336_v35 = vmul.f32 %v1867_v31, %v1867_v31 }
  0xc7   :  { %v341_v21 = vmul.f32 %v1828_v11, %v1828_v11 }
  0xca   :  { %v192_v36 = vpop.f32.mrf.mxu0 }
  0xcb   :  { %v193_v1 = vadd.f32 %v192_v36, %v1780_v49  ;;  %v1884_v36 = vmax.f32 %v166_v32, 0.0 }
  0xcd   :  { %1546 = vmatmul.msk.f32.gmra.mxu0 %vm51_vm0, %v41_v37  ;;  %v1821_v8 = vmax.f32 %v193_v1, 0.0 }
  0xcf   :  { %v342_v16 = vmul.f32 %v1821_v8, %v1821_v8 }
  0xd2   :  { %v195_v38 = vpop.f32.mrf.mxu0 }
  0xd3   :  { %v196_v61 = vadd.f32 %v195_v38, %v1780_v49  ;;  %v334_v38 = vmul.f32 %v1879_v20, %v1879_v20 }
  0xd5   :  { %1547 = vmatmul.msk.f32.gmra.mxu0 %vm51_vm0, %v42_v39  ;;  %v1815_v5 = vmax.f32 %v196_v61, 0.0  ;;  %v333_v39 = vmul.f32 %v1884_v36, %v1884_v36 }
  0xd7   :  { %v343_v12 = vmul.f32 %v1815_v5, %v1815_v5 }
  0xda   :  { %v198_v40 = vpop.f32.mrf.mxu0 }
  0xdb   :  { %v199_v58 = vadd.f32 %v198_v40, %v1780_v49 }
  0xdd   :  { %1548 = vmatmul.msk.f32.gmra.mxu0 %vm51_vm0, %v43_v41  ;;  %v1809_v2 = vmax.f32 %v199_v58, 0.0 }
  0xdf   :  { %v344_v9 = vmul.f32 %v1809_v2, %v1809_v2 }
  0xe2   :  { %v201_v42 = vpop.f32.mrf.mxu0 }
  0xe3   :  { %v202_v55 = vadd.f32 %v201_v42, %v1780_v49 }
  0xe5   :  { %1549 = vmatmul.msk.f32.gmra.mxu0 %vm51_vm0, %v44_v43  ;;  %v1801_v62 = vmax.f32 %v202_v55, 0.0 }
  0xe7   :  { %v345_v6 = vmul.f32 %v1801_v62, %v1801_v62 }
  0xea   :  { %v204_v44 = vpop.f32.mrf.mxu0 }
  0xeb   :  { %v205_v53 = vadd.f32 %v204_v44, %v1780_v49 }
  0xed   :  { %1550 = vmatmul.msk.f32.gmra.mxu0 %vm51_vm0, %v45_v45  ;;  %v1795_v59 = vmax.f32 %v205_v53, 0.0  ;;  %v1609_v53 = vmov 1.0  }
  0xef   :  { %v346_v3 = vmul.f32 %v1795_v59, %v1795_v59 }
  0xf2   :  { %v207_v46 = vpop.f32.mrf.mxu0 }
  0xf3   :  { %v208_v50 = vadd.f32 %v207_v46, %v1780_v49 }
  0xf5   :  { %1551 = vmatmul.msk.f32.gmra.mxu0 %vm51_vm0, %v46_v47  ;;  %v1789_v56 = vmax.f32 %v208_v50, 0.0 }
  0xf7   :  { %v347_v63 = vmul.f32 %v1789_v56, %v1789_v56 }
  0xfa   :  { %v210_v51 = vpop.f32.mrf.mxu0 }
  0xfb   :  { %v211_v54 = vadd.f32 %v210_v51, %v1780_v49 }
  0xfd   :  { %v1791_v57 = vmax.f32 %v211_v54, 0.0  ;;  %1552 = vmatmul.msk.f32.gmra.mxu0 %vm51_vm0, %v47_v52 }
  0xff   :  { %293 = vmatpush.msra.mxu1 %v1791_v57  ;;  %v348_v60 = vmul.f32 %v1791_v57, %v1791_v57 }
 0x101   :  { %294 = vmatpush.msra.mxu1 %v1789_v56  ;;  %365 = vmatpush.msra.mxu3 %v348_v60 }
 0x102   :  { %v1806_v0 = vpop.f32.mrf.mxu0 }
 0x103   :  { %295 = vmatpush.msra.mxu1 %v1795_v59  ;;  %366 = vmatpush.msra.mxu3 %v347_v63 }
 0x105   :  { %296 = vmatpush.msra.mxu1 %v1801_v62  ;;  %367 = vmatpush.msra.mxu3 %v346_v3 }
 0x107   :  { %297 = vmatpush.msra.mxu1 %v1809_v2  ;;  %368 = vmatpush.msra.mxu3 %v345_v6 }
 0x109   :  { %298 = vmatpush.msra.mxu1 %v1815_v5  ;;  %369 = vmatpush.msra.mxu3 %v344_v9 }
 0x10a   :  { %v1833_v13 = vpop.f32.mrf.mxu0 }
 0x10b   :  { %299 = vmatpush.msra.mxu1 %v1821_v8  ;;  %370 = vmatpush.msra.mxu3 %v343_v12 }
 0x10d   :  { %300 = vmatpush.msra.mxu1 %v1828_v11  ;;  %371 = vmatpush.msra.mxu3 %v342_v16 }
 0x10f   :  { %301 = vmatpush.msra.mxu1 %v1837_v15  ;;  %372 = vmatpush.msra.mxu3 %v341_v21 }
 0x111   :  { %302 = vmatpush.msra.mxu1 %v1844_v19  ;;  %373 = vmatpush.msra.mxu3 %v340_v27 }
 0x112   :  { %v1863_v24 = vpop.f32.mrf.mxu0 }
 0x113   :  { %303 = vmatpush.msra.mxu1 %v1851_v25  ;;  %374 = vmatpush.msra.mxu3 %v339_v29 }
 0x115   :  { %304 = vmatpush.msra.mxu1 %v1858_v28  ;;  %375 = vmatpush.msra.mxu3 %v338_v22 }
 0x117   :  { %305 = vmatpush.msra.mxu1 %v1867_v31  ;;  %376 = vmatpush.msra.mxu3 %v337_v34 }
 0x119   :  { %306 = vmatpush.msra.mxu1 %v1874_v33  ;;  %377 = vmatpush.msra.mxu3 %v336_v35 }
 0x11a   :  { %v1889_v37 = vpop.f32.mrf.mxu0 }
 0x11b   :  { %307 = vmatpush.msra.mxu1 %v1879_v20  ;;  %378 = vmatpush.msra.mxu3 %v335_v18 }
 0x11d   :  { %308 = vmatpush.msra.mxu1 %v1884_v36  ;;  %379 = vmatpush.msra.mxu3 %v334_v38 }
 0x11e   :  { %309 = vmatmul.f32.vlgmr.msra.gmra.mxu1 %v1609_v53 }
 0x11f   :  { %380 = vmatpush.msra.mxu3 %v333_v39 }
 0x120   :  { %381 = vmatmul.f32.vlgmr.msra.gmra.mxu3 %v1609_v53 }
 0x122   :  { %v225_v40 = vpop.f32.mrf.mxu0 }
 0x123   :  { %v226_v38 = vadd.f32 %v225_v40, %v1780_v49  ;;  %v220_v40 = vadd.f32 %v1863_v24, %v1780_v49  ;;  %v214_v24 = vadd.f32 %v1806_v0, %v1780_v49 }
 0x12a   :  { %v228_v41 = vpop.f32.mrf.mxu0 }
 0x12b   :  { %v229_v34 = vadd.f32 %v228_v41, %v1780_v49  ;;  %v223_v41 = vadd.f32 %v1889_v37, %v1780_v49  ;;  %v217_v37 = vadd.f32 %v1833_v13, %v1780_v49 }
 0x12d   :  { %v1983_v13 = vmax.f32 %v217_v37, 0.0 }
 0x12f   :  { %v350_v0 = vmul.f32 %v1983_v13, %v1983_v13 }
 0x132   :  { %v231_v42 = vpop.f32.mrf.mxu0 }
 0x133   :  { %v232_v30 = vadd.f32 %v231_v42, %v1780_v49 }
 0x135   :  { %v1950_v39 = vmax.f32 %v232_v30, 0.0  ;;  %v506_v30 = vld [vmem:[%s3072_s1 + $0x48] sm:$0xff] }
 0x13a   :  { %v234_v43 = vpop.f32.mrf.mxu0 }
 0x13b   :  { %v235_v27 = vadd.f32 %v234_v43, %v1780_v49  ;;  %v1957_v43 = vmax.f32 %v229_v34, 0.0 }
 0x13d   :  { %v1944_v35 = vmax.f32 %v235_v27, 0.0 }
 0x142   :  { %v237_v44 = vpop.f32.mrf.mxu0 }
 0x143   :  { %v238_v17 = vadd.f32 %v237_v44, %v1780_v49  ;;  %v356_v44 = vmul.f32 %v1944_v35, %v1944_v35 }
 0x145   :  { %v1938_v22 = vmax.f32 %v238_v17, 0.0  ;;  %v507_v17 = vld [vmem:[%s3072_s1 + $0x50] sm:$0xff] }
 0x147   :  { %v357_v42 = vmul.f32 %v1938_v22, %v1938_v22 }
 0x14a   :  { %v240_v45 = vpop.f32.mrf.mxu0 }
 0x14b   :  { %v241_v12 = vadd.f32 %v240_v45, %v1780_v49  ;;  %v1964_v45 = vmax.f32 %v226_v38, 0.0  ;;  %v505_v38 = vld [vmem:[%s3072_s1 + $0x40] sm:$0xff] }
 0x14d   :  { %v1932_v26 = vmax.f32 %v241_v12, 0.0  ;;  %v509_v12 = vld [vmem:[%s3072_s1 + $0x60] sm:$0xff] }
 0x14f   :  { %v358_v18 = vmul.f32 %v1932_v26, %v1932_v26 }
 0x152   :  { %v243_v46 = vpop.f32.mrf.mxu0 }
 0x153   :  { %v244_v7 = vadd.f32 %v243_v46, %v1780_v49  ;;  %v355_v46 = vmul.f32 %v1950_v39, %v1950_v39 }
 0x155   :  { %v1926_v21 = vmax.f32 %v244_v7, 0.0 }
 0x157   :  { %v359_v32 = vmul.f32 %v1926_v21, %v1926_v21 }
 0x15a   :  { %v246_v47 = vpop.f32.mrf.mxu0 }
 0x15b   :  { %v247_v3 = vadd.f32 %v246_v47, %v1780_v49  ;;  %v1971_v47 = vmax.f32 %v223_v41, 0.0 }
 0x15d   :  { %v1920_v14 = vmax.f32 %v247_v3, 0.0  ;;  %v512_v3 = vld [vmem:[%s3072_s1 + $0x78] sm:$0xff] }
 0x15f   :  { %v360_v29 = vmul.f32 %v1920_v14, %v1920_v14 }
 0x162   :  { %v249_v50 = vpop.f32.mrf.mxu0 }
 0x163   :  { %v250_v61 = vadd.f32 %v249_v50, %v1780_v49  ;;  %v354_v50 = vmul.f32 %v1957_v43, %v1957_v43 }
 0x165   :  { %v1914_v9 = vmax.f32 %v250_v61, 0.0  ;;  %v513_v61 = vld [vmem:[%s3072_s1 + $0x80] sm:$0xff] }
 0x167   :  { %v361_v23 = vmul.f32 %v1914_v9, %v1914_v9 }
 0x16a   :  { %v252_v51 = vpop.f32.mrf.mxu0 }
 0x16b   :  { %v253_v58 = vadd.f32 %v252_v51, %v1780_v49  ;;  %v1978_v51 = vmax.f32 %v220_v40, 0.0 }
 0x16d   :  { %v1908_v4 = vmax.f32 %v253_v58, 0.0 }
 0x16f   :  { %v362_v16 = vmul.f32 %v1908_v4, %v1908_v4 }
 0x172   :  { %v255_v52 = vpop.f32.mrf.mxu0 }
 0x173   :  { %v256_v54 = vadd.f32 %v255_v52, %v1780_v49  ;;  %v353_v52 = vmul.f32 %v1964_v45, %v1964_v45 }
 0x175   :  { %v1903_v63 = vmax.f32 %v256_v54, 0.0  ;;  %v352_v54 = vmul.f32 %v1971_v47, %v1971_v47 }
 0x177   :  { %v363_v10 = vmul.f32 %v1903_v63, %v1903_v63 }
 0x17a   :  { %v258_v55 = vpop.f32.mrf.mxu0 }
 0x17b   :  { %v259_v60 = vadd.f32 %v258_v55, %v1780_v49  ;;  %v1988_v55 = vmax.f32 %v214_v24, 0.0  ;;  %v351_v49 = vmul.f32 %v1978_v51, %v1978_v51 }
 0x17d   :  { %v1905_v1 = vmax.f32 %v259_v60, 0.0  ;;  %v349_v58 = vmul.f32 %v1988_v55, %v1988_v55  ;;  %v514_v60 = vld [vmem:[%s3072_s1 + $0x88] sm:$0xff] }
 0x17e   :  { %516 = vmatpush.msra.mxu2 %v514_v60 }
 0x17f   :  { %313 = vmatpush.msrb.mxu0 %v1905_v1  ;;  %v364_v6 = vmul.f32 %v1905_v1, %v1905_v1 }
 0x180   :  { %517 = vmatpush.msra.mxu2 %v513_v61 }
 0x181   :  { %314 = vmatpush.msrb.mxu0 %v1903_v63  ;;  %385 = vmatpush.msrb.mxu1 %v364_v6  ;;  %v511_v6 = vld [vmem:[%s3072_s1 + $0x70] sm:$0xff] }
 0x182   :  { %518 = vmatpush.msra.mxu2 %v512_v3 }
 0x183   :  { %315 = vmatpush.msrb.mxu0 %v1908_v4  ;;  %386 = vmatpush.msrb.mxu1 %v363_v10  ;;  %v510_v10 = vld [vmem:[%s3072_s1 + $0x68] sm:$0xff] }
 0x184   :  { %519 = vmatpush.msra.mxu2 %v511_v6 }
 0x185   :  { %316 = vmatpush.msrb.mxu0 %v1914_v9  ;;  %387 = vmatpush.msrb.mxu1 %v362_v16  ;;  %v508_v16 = vld [vmem:[%s3072_s1 + $0x58] sm:$0xff] }
 0x186   :  { %520 = vmatpush.msra.mxu2 %v510_v10 }
 0x187   :  { %317 = vmatpush.msrb.mxu0 %v1920_v14  ;;  %388 = vmatpush.msrb.mxu1 %v361_v23 }
 0x188   :  { %521 = vmatpush.msra.mxu2 %v509_v12 }
 0x189   :  { %318 = vmatpush.msrb.mxu0 %v1926_v21  ;;  %389 = vmatpush.msrb.mxu1 %v360_v29 }
 0x18a   :  { %522 = vmatpush.msra.mxu2 %v508_v16 }
 0x18b   :  { %319 = vmatpush.msrb.mxu0 %v1932_v26  ;;  %390 = vmatpush.msrb.mxu1 %v359_v32 }
 0x18c   :  { %523 = vmatpush.msra.mxu2 %v507_v17 }
 0x18d   :  { %320 = vmatpush.msrb.mxu0 %v1938_v22  ;;  %391 = vmatpush.msrb.mxu1 %v358_v18 }
 0x18e   :  { %524 = vmatpush.msra.mxu2 %v506_v30 }
 0x18f   :  { %321 = vmatpush.msrb.mxu0 %v1944_v35  ;;  %392 = vmatpush.msrb.mxu1 %v357_v42 }
 0x190   :  { %525 = vmatpush.msra.mxu2 %v505_v38 }
 0x191   :  { %322 = vmatpush.msrb.mxu0 %v1950_v39  ;;  %393 = vmatpush.msrb.mxu1 %v356_v44  ;;  %v504_v44 = vld [vmem:[%s3072_s1 + $0x38] sm:$0xff] }
 0x192   :  { %526 = vmatpush.msra.mxu2 %v504_v44 }
 0x193   :  { %323 = vmatpush.msrb.mxu0 %v1957_v43  ;;  %394 = vmatpush.msrb.mxu1 %v355_v46  ;;  %v503_v46 = vld [vmem:[%s3072_s1 + $0x30] sm:$0xff] }
 0x194   :  { %527 = vmatpush.msra.mxu2 %v503_v46 }
 0x195   :  { %324 = vmatpush.msrb.mxu0 %v1964_v45  ;;  %395 = vmatpush.msrb.mxu1 %v354_v50  ;;  %v502_v50 = vld [vmem:[%s3072_s1 + $0x28] sm:$0xff] }
 0x196   :  { %528 = vmatpush.msra.mxu2 %v502_v50 }
 0x197   :  { %325 = vmatpush.msrb.mxu0 %v1971_v47  ;;  %396 = vmatpush.msrb.mxu1 %v353_v52  ;;  %v501_v52 = vld [vmem:[%s3072_s1 + $0x20] sm:$0xff] }
 0x198   :  { %529 = vmatpush.msra.mxu2 %v501_v52 }
 0x199   :  { %326 = vmatpush.msrb.mxu0 %v1978_v51  ;;  %397 = vmatpush.msrb.mxu1 %v352_v54  ;;  %v500_v54 = vld [vmem:[%s3072_s1 + $0x18] sm:$0xff] }
 0x19a   :  { %530 = vmatpush.msra.mxu2 %v500_v54 }
 0x19b   :  { %327 = vmatpush.msrb.mxu0 %v1983_v13  ;;  %398 = vmatpush.msrb.mxu1 %v351_v49  ;;  %v310_v7 = vpop.f32.mrf.mxu1  ;;  %v499_v49 = vld [vmem:[%s3072_s1 + $0x10] sm:$0xff] }
 0x19c   :  { %531 = vmatpush.msra.mxu2 %v499_v49 }
 0x19d   :  { %328 = vmatpush.msrb.mxu0 %v1988_v55  ;;  %399 = vmatpush.msrb.mxu1 %v350_v0 }
 0x19e   :  { %329 = vmatmul.f32.vlgmr.msrb.gmra.mxu0 %v1609_v53 }
 0x19f   :  { %400 = vmatpush.msrb.mxu1 %v349_v58 }
 0x1a0   :  { %401 = vmatmul.f32.vlgmr.msrb.gmra.mxu1 %v1609_v53 }
 0x1a3   :  { %v382_v27 = vpop.f32.mrf.mxu3 }
 0x21b   :  { %v330_v23 = vpop.f32.mrf.mxu0 }
 0x21c   :  { %v331_v29 = vadd.f32 %v330_v23, %v310_v7 }
 0x21d   :  { %v402_v32 = vpop.f32.mrf.mxu1 }
 0x21e   :  { %v405_v34 = vmul.f32 0.00390625, %v331_v29  ;;  %v403_v18 = vadd.f32 %v402_v32, %v382_v27 }
 0x220   :  { %v407_v42 = vmul.f32 %v405_v34, %v405_v34  ;;  %v406_v41 = vmul.f32 0.00390625, %v403_v18 }
 0x222   :  { %v408_v40 = vsub.f32 %v406_v41, %v407_v42 }
 0x224   :  { %v409_v37 = vmax.f32 %v408_v40, 0.0 }
 0x226   :  { %v410_v24 = vadd.f32 1e-05, %v409_v37 }
 0x228   :  { %1602 = vrsqrt.f32 %v410_v24  ;;  %vm417_vm2 = vweird.f32 %v410_v24 }
 0x22e   :  { %v1603_v0 = vpop.eup %1602 }
 0x22f   :  { %v412_v58 = vmul.f32 %v1603_v0, %v410_v24  ;;  %vm418_vm1 = vweird.f32 %v1603_v0 }
 0x230   :  { %vm419_vm3 = vmor %vm417_vm2, %vm418_vm1 }
 0x231   :  { %v413_v60 = vmul.f32 %v1603_v0, %v412_v58 }
 0x233   :  { %v414_v61 = vmul.f32 0.5, %v413_v60 }
 0x235   :  { %v415_v3 = vsub.f32 1.5, %v414_v61 }
 0x237   :  { %v416_v6 = vmul.f32 %v1603_v0, %v415_v3 }
 0x239   :  { %v420_v7 = vsel %vm419_vm3, %v1603_v0, %v416_v6 }
 0x23a   :  { %v422_v10 = vrot.slane %v420_v7, 7 }
 0x23c   :  { %v424_v12 = vmul.f32 %v422_v10, %v1776_v48 }
 0x23e   :  { %v426_v16 = vrot.slane %v424_v12, 1  ;;  %v2050_v17 = vperm.slane %v424_v12, 1 }
 0x240   :  { %v428_v23 = vmul.f32 %v426_v16, %v405_v34  ;;  %v458_v29 = vmul.f32 %v2050_v17, %v1938_v22  ;;  %v459_v30 = vmul.f32 %v2050_v17, %v1932_v26  ;;  %v460_v18 = vmul.f32 %v2050_v17, %v1926_v21 }
 0x241   :  { %v461_v38 = vmul.f32 %v2050_v17, %v1920_v14  ;;  %v462_v42 = vmul.f32 %v2050_v17, %v1914_v9  ;;  %v463_v34 = vmul.f32 %v2050_v17, %v1908_v4  ;;  %v464_v22 = vmul.f32 %v2050_v17, %v1903_v63 }
 0x242   :  { %v430_v27 = vrot.slane %v428_v23, 6  ;;  %v465_v26 = vmul.f32 %v2050_v17, %v1905_v1  ;;  %v434_v41 = vmul.f32 %v2050_v17, %v1884_v36  ;;  %v435_v21 = vmul.f32 %v2050_v17, %v1879_v20 }
 0x243   :  { %v442_v14 = vmul.f32 %v2050_v17, %v1828_v11  ;;  %v443_v9 = vmul.f32 %v2050_v17, %v1821_v8  ;;  %v444_v4 = vmul.f32 %v2050_v17, %v1815_v5  ;;  %v445_v63 = vmul.f32 %v2050_v17, %v1809_v2 }
 0x244   :  { %v432_v32 = vsub.f32 %v1776_v48, %v430_v27  ;;  %v446_v1 = vmul.f32 %v2050_v17, %v1801_v62  ;;  %v447_v36 = vmul.f32 %v2050_v17, %v1795_v59  ;;  %v448_v20 = vmul.f32 %v2050_v17, %v1789_v56 }
 0x245   :  { %v449_v11 = vmul.f32 %v2050_v17, %v1791_v57  ;;  %v450_v8 = vmul.f32 %v2050_v17, %v1988_v55  ;;  %v451_v2 = vmul.f32 %v2050_v17, %v1983_v13  ;;  %v452_v62 = vmul.f32 %v2050_v17, %v1978_v51 }
 0x246   :  { %v466_v44 = vperm.slane %v432_v32, 2  ;;  %v453_v59 = vmul.f32 %v2050_v17, %v1971_v47  ;;  %v454_v13 = vmul.f32 %v2050_v17, %v1964_v45  ;;  %v455_v51 = vmul.f32 %v2050_v17, %v1957_v43 }
 0x247   :  { %v456_v47 = vmul.f32 %v2050_v17, %v1950_v39  ;;  %v457_v60 = vmul.f32 %v2050_v17, %v1944_v35  ;;  %v436_v43 = vmul.f32 %v2050_v17, %v1874_v33  ;;  %v437_v35 = vmul.f32 %v2050_v17, %v1867_v31 }
 0x248   :  { %v467_v40 = vadd.f32 %v466_v44, %v434_v41  ;;  %v468_v5 = vadd.f32 %v466_v44, %v435_v21  ;;  %v475_v46 = vadd.f32 %v466_v44, %v442_v14  ;;  %v476_v37 = vadd.f32 %v466_v44, %v443_v9 }
 0x249   :  { %v477_v56 = vadd.f32 %v466_v44, %v444_v4  ;;  %v478_v50 = vadd.f32 %v466_v44, %v445_v63  ;;  %v479_v24 = vadd.f32 %v466_v44, %v446_v1  ;;  %v480_v57 = vadd.f32 %v466_v44, %v447_v36 }
 0x24a   :  { %532 = vmatmul.f32.vlgmr.msra.gmra.mxu2 %v467_v40  ;;  %v481_v52 = vadd.f32 %v466_v44, %v448_v20  ;;  %v482_v54 = vadd.f32 %v466_v44, %v449_v11  ;;  %v483_v55 = vadd.f32 %v466_v44, %v450_v8  ;;  %v484_v49 = vadd.f32 %v466_v44, %v451_v2 }
 0x24b   :  { %v485_v0 = vadd.f32 %v466_v44, %v452_v62  ;;  %v486_v58 = vadd.f32 %v466_v44, %v453_v59  ;;  %v491_v61 = vadd.f32 %v466_v44, %v458_v29  ;;  %v492_v3 = vadd.f32 %v466_v44, %v459_v30 }
 0x24c   :  { %v493_v6 = vadd.f32 %v466_v44, %v460_v18  ;;  %v494_v7 = vadd.f32 %v466_v44, %v461_v38  ;;  %v487_v10 = vadd.f32 %v466_v44, %v454_v13  ;;  %v488_v12 = vadd.f32 %v466_v44, %v455_v51 }
 0x24d   :  { %v489_v16 = vadd.f32 %v466_v44, %v456_v47  ;;  %v490_v23 = vadd.f32 %v466_v44, %v457_v60  ;;  %v495_v27 = vadd.f32 %v466_v44, %v462_v42  ;;  %v496_v32 = vadd.f32 %v466_v44, %v463_v34 }
 0x24e   :  { %v497_v45 = vadd.f32 %v466_v44, %v464_v22  ;;  %v498_v41 = vadd.f32 %v466_v44, %v465_v26  ;;  %v469_v39 = vadd.f32 %v466_v44, %v436_v43  ;;  %v470_v29 = vadd.f32 %v466_v44, %v437_v35 }
 0x24f   :  { %v438_v30 = vmul.f32 %v2050_v17, %v1858_v28  ;;  %v439_v38 = vmul.f32 %v2050_v17, %v1851_v25  ;;  %v440_v33 = vmul.f32 %v2050_v17, %v1844_v19  ;;  %v441_v31 = vmul.f32 %v2050_v17, %v1837_v15 }
 0x250   :  { %v2128_v20 = vperm.slane %v1776_v48, 3 }
 0x251   :  { %v471_v18 = vadd.f32 %v466_v44, %v438_v30  ;;  %v472_v42 = vadd.f32 %v466_v44, %v439_v38  ;;  %v473_v34 = vadd.f32 %v466_v44, %v440_v33  ;;  %v474_v22 = vadd.f32 %v466_v44, %v441_v31 }
 0x252   :  { %535 = vmatmul.f32.gmra.mxu2 %v468_v5 }
 0x25a   :  { %538 = vmatmul.f32.gmra.mxu2 %v469_v39 }
 0x262   :  { %541 = vmatmul.f32.gmra.mxu2 %v470_v29 }
 0x26a   :  { %544 = vmatmul.f32.gmra.mxu2 %v471_v18 }
 0x272   :  { %547 = vmatmul.f32.gmra.mxu2 %v472_v42 }
 0x27a   :  { %550 = vmatmul.f32.gmra.mxu2 %v473_v34 }
 0x282   :  { %553 = vmatmul.f32.gmra.mxu2 %v474_v22 }
 0x28a   :  { %556 = vmatmul.f32.gmra.mxu2 %v475_v46 }
 0x292   :  { %559 = vmatmul.f32.gmra.mxu2 %v476_v37 }
 0x29a   :  { %562 = vmatmul.f32.gmra.mxu2 %v477_v56 }
 0x2a2   :  { %565 = vmatmul.f32.gmra.mxu2 %v478_v50 }
 0x2aa   :  { %568 = vmatmul.f32.gmra.mxu2 %v479_v24 }
 0x2b2   :  { %571 = vmatmul.f32.gmra.mxu2 %v480_v57 }
 0x2ba   :  { %574 = vmatmul.f32.gmra.mxu2 %v481_v52 }
 0x2c2   :  { %577 = vmatmul.f32.gmra.mxu2 %v482_v54 }
 0x2ca   :  { %580 = vmatmul.f32.gmra.mxu2 %v483_v55 }
 0x2cd   :  { %v2117_v25 = vpop.f32.mrf.mxu2 }
 0x2ce   :  { %v534_v33 = vadd.f32 %v2117_v25, %v2128_v20 }
 0x2d2   :  { %583 = vmatmul.f32.gmra.mxu2 %v484_v49 }
 0x2d5   :  { %v2119_v19 = vpop.f32.mrf.mxu2 }
 0x2d6   :  { %v537_v18 = vadd.f32 %v2119_v19, %v2128_v20 }
 0x2d8   :  { %v2221_v22 = vmax.f32 %v537_v18, 0.0 }
 0x2da   :  { %586 = vmatmul.f32.gmra.mxu2 %v485_v0 }
 0x2dd   :  { %v2121_v28 = vpop.f32.mrf.mxu2 }
 0x2de   :  { %v540_v39 = vadd.f32 %v2121_v28, %v2128_v20  ;;  %v2226_v28 = vmax.f32 %v534_v33, 0.0 }
 0x2e0   :  { %v2216_v34 = vmax.f32 %v540_v39, 0.0 }
 0x2e2   :  { %589 = vmatmul.f32.gmra.mxu2 %v486_v58  ;;  %v703_v25 = vmul.f32 %v2216_v34, %v2216_v34 }
 0x2e5   :  { %v2123_v15 = vpop.f32.mrf.mxu2 }
 0x2ea   :  { %592 = vmatmul.f32.gmra.mxu2 %v487_v10 }
 0x2ed   :  { %v2125_v17 = vpop.f32.mrf.mxu2 }
 0x2f2   :  { %595 = vmatmul.f32.gmra.mxu2 %v488_v12 }
 0x2f5   :  { %v548_v26 = vpop.f32.mrf.mxu2 }
 0x2f6   :  { %v549_v10 = vadd.f32 %v548_v26, %v2128_v20  ;;  %v701_v26 = vmul.f32 %v2226_v28, %v2226_v28 }
 0x2fa   :  { %598 = vmatmul.f32.gmra.mxu2 %v489_v16 }
 0x2fd   :  { %v551_v44 = vpop.f32.mrf.mxu2 }
 0x302   :  { %601 = vmatmul.f32.gmra.mxu2 %v490_v23  ;;  %v546_v23 = vadd.f32 %v2125_v17, %v2128_v20  ;;  %v702_v17 = vmul.f32 %v2221_v22, %v2221_v22 }
 0x304   :  { %v2200_v35 = vmax.f32 %v546_v23, 0.0 }
 0x305   :  { %v554_v21 = vpop.f32.mrf.mxu2 }
 0x306   :  { %v555_v51 = vadd.f32 %v554_v21, %v2128_v20  ;;  %v705_v31 = vmul.f32 %v2200_v35, %v2200_v35 }
 0x308   :  { %v2179_v12 = vmax.f32 %v555_v51, 0.0 }
 0x30a   :  { %604 = vmatmul.f32.gmra.mxu2 %v491_v61  ;;  %v552_v61 = vadd.f32 %v551_v44, %v2128_v20  ;;  %v708_v43 = vmul.f32 %v2179_v12, %v2179_v12 }
 0x30d   :  { %v557_v14 = vpop.f32.mrf.mxu2 }
 0x30e   :  { %v558_v0 = vadd.f32 %v557_v14, %v2128_v20 }
 0x312   :  { %607 = vmatmul.f32.gmra.mxu2 %v492_v3  ;;  %v2171_v3 = vmax.f32 %v558_v0, 0.0 }
 0x315   :  { %v560_v9 = vpop.f32.mrf.mxu2 }
 0x316   :  { %v561_v54 = vadd.f32 %v560_v9, %v2128_v20 }
 0x318   :  { %v2165_v47 = vmax.f32 %v561_v54, 0.0 }
 0x31a   :  { %610 = vmatmul.f32.gmra.mxu2 %v493_v6  ;;  %v710_v16 = vmul.f32 %v2165_v47, %v2165_v47 }
 0x31d   :  { %v563_v4 = vpop.f32.mrf.mxu2 }
 0x31e   :  { %v564_v50 = vadd.f32 %v563_v4, %v2128_v20 }
 0x320   :  { %v2159_v58 = vmax.f32 %v564_v50, 0.0 }
 0x322   :  { %613 = vmatmul.f32.gmra.mxu2 %v494_v7  ;;  %v711_v6 = vmul.f32 %v2159_v58, %v2159_v58 }
 0x325   :  { %v566_v63 = vpop.f32.mrf.mxu2 }
 0x326   :  { %v567_v37 = vadd.f32 %v566_v63, %v2128_v20 }
 0x328   :  { %v2153_v55 = vmax.f32 %v567_v37, 0.0 }
 0x32a   :  { %616 = vmatmul.f32.gmra.mxu2 %v495_v27  ;;  %v712_v60 = vmul.f32 %v2153_v55, %v2153_v55  ;;  %v2186_v27 = vmax.f32 %v552_v61, 0.0 }
 0x32c   :  { %v707_v29 = vmul.f32 %v2186_v27, %v2186_v27 }
 0x32d   :  { %v569_v1 = vpop.f32.mrf.mxu2 }
 0x32e   :  { %v570_v62 = vadd.f32 %v569_v1, %v2128_v20 }
 0x330   :  { %v2145_v24 = vmax.f32 %v570_v62, 0.0 }
 0x332   :  { %619 = vmatmul.f32.gmra.mxu2 %v496_v32  ;;  %v713_v13 = vmul.f32 %v2145_v24, %v2145_v24  ;;  %v709_v32 = vmul.f32 %v2171_v3, %v2171_v3 }
 0x335   :  { %v572_v36 = vpop.f32.mrf.mxu2 }
 0x336   :  { %v573_v5 = vadd.f32 %v572_v36, %v2128_v20 }
 0x338   :  { %v2139_v56 = vmax.f32 %v573_v5, 0.0 }
 0x33a   :  { %622 = vmatmul.f32.gmra.mxu2 %v497_v45  ;;  %v714_v49 = vmul.f32 %v2139_v56, %v2139_v56  ;;  %v543_v45 = vadd.f32 %v2123_v15, %v2128_v20 }
 0x33c   :  { %v2209_v38 = vmax.f32 %v543_v45, 0.0 }
 0x33d   :  { %v575_v40 = vpop.f32.mrf.mxu2 }
 0x33e   :  { %v576_v11 = vadd.f32 %v575_v40, %v2128_v20  ;;  %v704_v19 = vmul.f32 %v2209_v38, %v2209_v38 }
 0x340   :  { %v2134_v59 = vmax.f32 %v576_v11, 0.0 }
 0x342   :  { %625 = vmatmul.f32.gmra.mxu2 %v498_v41  ;;  %v715_v57 = vmul.f32 %v2134_v59, %v2134_v59  ;;  %v2193_v41 = vmax.f32 %v549_v10, 0.0 }
 0x344   :  { %v706_v42 = vmul.f32 %v2193_v41, %v2193_v41 }
 0x345   :  { %v578_v8 = vpop.f32.mrf.mxu2 }
 0x346   :  { %v579_v2 = vadd.f32 %v578_v8, %v2128_v20 }
 0x348   :  { %v2136_v46 = vmax.f32 %v579_v2, 0.0 }
 0x34a   :  { %661 = vmatpush.msrb.mxu2 %v2136_v46  ;;  %v716_v48 = vmul.f32 %v2136_v46, %v2136_v46 }
 0x34c   :  { %662 = vmatpush.msrb.mxu2 %v2134_v59  ;;  %733 = vmatpush.msrb.mxu3 %v716_v48 }
 0x34d   :  { %v2150_v52 = vpop.f32.mrf.mxu2 }
 0x34e   :  { %663 = vmatpush.msrb.mxu2 %v2139_v56  ;;  %734 = vmatpush.msrb.mxu3 %v715_v57 }
 0x350   :  { %664 = vmatpush.msrb.mxu2 %v2145_v24  ;;  %735 = vmatpush.msrb.mxu3 %v714_v49 }
 0x352   :  { %665 = vmatpush.msrb.mxu2 %v2153_v55  ;;  %736 = vmatpush.msrb.mxu3 %v713_v13 }
 0x354   :  { %666 = vmatpush.msrb.mxu2 %v2159_v58  ;;  %737 = vmatpush.msrb.mxu3 %v712_v60 }
 0x355   :  { %v2176_v7 = vpop.f32.mrf.mxu2 }
 0x356   :  { %667 = vmatpush.msrb.mxu2 %v2165_v47  ;;  %738 = vmatpush.msrb.mxu3 %v711_v6 }
 0x358   :  { %668 = vmatpush.msrb.mxu2 %v2171_v3  ;;  %739 = vmatpush.msrb.mxu3 %v710_v16 }
 0x35a   :  { %669 = vmatpush.msrb.mxu2 %v2179_v12  ;;  %740 = vmatpush.msrb.mxu3 %v709_v32 }
 0x35c   :  { %670 = vmatpush.msrb.mxu2 %v2186_v27  ;;  %741 = vmatpush.msrb.mxu3 %v708_v43 }
 0x35d   :  { %v2205_v30 = vpop.f32.mrf.mxu2 }
 0x35e   :  { %671 = vmatpush.msrb.mxu2 %v2193_v41  ;;  %742 = vmatpush.msrb.mxu3 %v707_v29  ;;  %v588_v33 = vadd.f32 %v2205_v30, %v2128_v20 }
 0x360   :  { %672 = vmatpush.msrb.mxu2 %v2200_v35  ;;  %743 = vmatpush.msrb.mxu3 %v706_v42 }
 0x362   :  { %673 = vmatpush.msrb.mxu2 %v2209_v38  ;;  %744 = vmatpush.msrb.mxu3 %v705_v31 }
 0x364   :  { %674 = vmatpush.msrb.mxu2 %v2216_v34  ;;  %745 = vmatpush.msrb.mxu3 %v704_v19  ;;  %v585_v19 = vadd.f32 %v2176_v7, %v2128_v20 }
 0x365   :  { %v590_v15 = vpop.f32.mrf.mxu2 }
 0x366   :  { %675 = vmatpush.msrb.mxu2 %v2221_v22  ;;  %746 = vmatpush.msrb.mxu3 %v703_v25  ;;  %v591_v18 = vadd.f32 %v590_v15, %v2128_v20  ;;  %v582_v15 = vadd.f32 %v2150_v52, %v2128_v20 }
 0x368   :  { %676 = vmatpush.msrb.mxu2 %v2226_v28  ;;  %747 = vmatpush.msrb.mxu3 %v702_v17  ;;  %v2291_v25 = vmax.f32 %v591_v18, 0.0  ;;  %v2296_v17 = vmax.f32 %v588_v33, 0.0  ;;  %v2302_v30 = vmax.f32 %v582_v15, 0.0  ;;  %v874_v33 = vld [vmem:[%s3072_s1 + $0xc8] sm:$0xff]  ;;  %v872_v15 = vld [vmem:[%s3072_s1 + $0xb8] sm:$0xff] }
 0x369   :  { %677 = vmatmul.f32.vlgmr.msrb.gmra.mxu2 %v1609_v53  ;;  %981 = vmatpush.msra.mxu0 %v874_v33 }
 0x36a   :  { %748 = vmatpush.msrb.mxu3 %v701_v26  ;;  %v2299_v26 = vmax.f32 %v585_v19, 0.0  ;;  %v873_v19 = vld [vmem:[%s3072_s1 + $0xc0] sm:$0xff] }
 0x36b   :  { %749 = vmatmul.f32.vlgmr.msrb.gmra.mxu3 %v1609_v53  ;;  %982 = vmatpush.msra.mxu0 %v873_v19 }
 0x36c   :  { %1586 = vmatpush.msra.mxu3 %v874_v33 }
 0x36d   :  { %v593_v44 = vpop.f32.mrf.mxu2  ;;  %983 = vmatpush.msra.mxu0 %v872_v15 }
 0x36e   :  { %v594_v39 = vadd.f32 %v593_v44, %v2128_v20  ;;  %1588 = vmatpush.msra.mxu3 %v873_v19 }
 0x370   :  { %v2286_v31 = vmax.f32 %v594_v39, 0.0  ;;  %1590 = vmatpush.msra.mxu3 %v872_v15 }
 0x375   :  { %v596_v21 = vpop.f32.mrf.mxu2 }
 0x376   :  { %v597_v45 = vadd.f32 %v596_v21, %v2128_v20 }
 0x378   :  { %v2281_v42 = vmax.f32 %v597_v45, 0.0 }
 0x37d   :  { %v599_v14 = vpop.f32.mrf.mxu2 }
 0x37e   :  { %v600_v23 = vadd.f32 %v599_v14, %v2128_v20 }
 0x380   :  { %v2277_v29 = vmax.f32 %v600_v23, 0.0 }
 0x385   :  { %v602_v9 = vpop.f32.mrf.mxu2 }
 0x386   :  { %v603_v10 = vadd.f32 %v602_v9, %v2128_v20 }
 0x388   :  { %v2273_v43 = vmax.f32 %v603_v10, 0.0 }
 0x38d   :  { %v605_v4 = vpop.f32.mrf.mxu2 }
 0x38e   :  { %v606_v61 = vadd.f32 %v605_v4, %v2128_v20 }
 0x390   :  { %v2269_v32 = vmax.f32 %v606_v61, 0.0 }
 0x392   :  { %v725_v4 = vmul.f32 %v2269_v32, %v2269_v32 }
 0x395   :  { %v608_v63 = vpop.f32.mrf.mxu2 }
 0x396   :  { %v609_v51 = vadd.f32 %v608_v63, %v2128_v20  ;;  %v724_v63 = vmul.f32 %v2273_v43, %v2273_v43 }
 0x398   :  { %v2265_v16 = vmax.f32 %v609_v51, 0.0 }
 0x39a   :  { %v726_v9 = vmul.f32 %v2265_v16, %v2265_v16 }
 0x39d   :  { %v611_v1 = vpop.f32.mrf.mxu2 }
 0x39e   :  { %v612_v0 = vadd.f32 %v611_v1, %v2128_v20  ;;  %v723_v1 = vmul.f32 %v2277_v29, %v2277_v29 }
 0x3a0   :  { %v2261_v6 = vmax.f32 %v612_v0, 0.0 }
 0x3a2   :  { %v727_v14 = vmul.f32 %v2261_v6, %v2261_v6 }
 0x3a5   :  { %v614_v36 = vpop.f32.mrf.mxu2 }
 0x3a6   :  { %v615_v54 = vadd.f32 %v614_v36, %v2128_v20  ;;  %v722_v36 = vmul.f32 %v2281_v42, %v2281_v42 }
 0x3a8   :  { %v2257_v60 = vmax.f32 %v615_v54, 0.0 }
 0x3aa   :  { %v728_v21 = vmul.f32 %v2257_v60, %v2257_v60 }
 0x3ad   :  { %v617_v40 = vpop.f32.mrf.mxu2 }
 0x3ae   :  { %v618_v50 = vadd.f32 %v617_v40, %v2128_v20  ;;  %v721_v40 = vmul.f32 %v2286_v31, %v2286_v31 }
 0x3b0   :  { %v2253_v13 = vmax.f32 %v618_v50, 0.0 }
 0x3b2   :  { %v729_v44 = vmul.f32 %v2253_v13, %v2253_v13 }
 0x3b5   :  { %v620_v11 = vpop.f32.mrf.mxu2 }
 0x3b6   :  { %v621_v37 = vadd.f32 %v620_v11, %v2128_v20  ;;  %v720_v11 = vmul.f32 %v2291_v25, %v2291_v25 }
 0x3b8   :  { %v2249_v49 = vmax.f32 %v621_v37, 0.0 }
 0x3ba   :  { %v730_v52 = vmul.f32 %v2249_v49, %v2249_v49 }
 0x3bd   :  { %v623_v8 = vpop.f32.mrf.mxu2 }
 0x3be   :  { %v624_v2 = vadd.f32 %v623_v8, %v2128_v20  ;;  %v719_v8 = vmul.f32 %v2296_v17, %v2296_v17 }
 0x3c0   :  { %v2245_v57 = vmax.f32 %v624_v2, 0.0  ;;  %v717_v2 = vmul.f32 %v2302_v30, %v2302_v30 }
 0x3c5   :  { %v626_v5 = vpop.f32.mrf.mxu2 }
 0x3c6   :  { %v627_v62 = vadd.f32 %v626_v5, %v2128_v20  ;;  %v731_v20 = vmul.f32 %v2245_v57, %v2245_v57  ;;  %v718_v5 = vmul.f32 %v2299_v26, %v2299_v26 }
 0x3c8   :  { %v2242_v48 = vmax.f32 %v627_v62, 0.0 }
 0x3ca   :  { %681 = vmatpush.msra.mxu1 %v2242_v48  ;;  %v732_v7 = vmul.f32 %v2242_v48, %v2242_v48 }
 0x3cc   :  { %682 = vmatpush.msra.mxu1 %v2245_v57 }
 0x3ce   :  { %683 = vmatpush.msra.mxu1 %v2249_v49 }
 0x3d0   :  { %684 = vmatpush.msra.mxu1 %v2253_v13 }
 0x3d2   :  { %685 = vmatpush.msra.mxu1 %v2257_v60 }
 0x3d4   :  { %686 = vmatpush.msra.mxu1 %v2261_v6 }
 0x3d6   :  { %687 = vmatpush.msra.mxu1 %v2265_v16 }
 0x3d8   :  { %688 = vmatpush.msra.mxu1 %v2269_v32 }
 0x3da   :  { %689 = vmatpush.msra.mxu1 %v2273_v43 }
 0x3dc   :  { %690 = vmatpush.msra.mxu1 %v2277_v29 }
 0x3de   :  { %691 = vmatpush.msra.mxu1 %v2281_v42 }
 0x3e0   :  { %692 = vmatpush.msra.mxu1 %v2286_v31 }
 0x3e2   :  { %693 = vmatpush.msra.mxu1 %v2291_v25 }
 0x3e4   :  { %694 = vmatpush.msra.mxu1 %v2296_v17 }
 0x3e6   :  { %695 = vmatpush.msra.mxu1 %v2299_v26 }
 0x3e8   :  { %696 = vmatpush.msra.mxu1 %v2302_v30 }
 0x3e9   :  { %697 = vmatmul.f32.vlgmr.msra.gmra.mxu1 %v1609_v53 }
 0x3ea   :  { %753 = vmatpush.msrb.mxu1 %v732_v7  ;;  %v871_v7 = vld [vmem:[%s3072_s1 + $0xb0] sm:$0xff] }
 0x3eb   :  { %984 = vmatpush.msra.mxu0 %v871_v7  ;;  %1592 = vmatpush.msra.mxu3 %v871_v7 }
 0x3ec   :  { %754 = vmatpush.msrb.mxu1 %v731_v20  ;;  %v678_v37 = vpop.f32.mrf.mxu2  ;;  %v870_v20 = vld [vmem:[%s3072_s1 + $0xa8] sm:$0xff] }
 0x3ed   :  { %985 = vmatpush.msra.mxu0 %v870_v20  ;;  %1594 = vmatpush.msra.mxu3 %v870_v20 }
 0x3ee   :  { %755 = vmatpush.msrb.mxu1 %v730_v52  ;;  %v750_v54 = vpop.f32.mrf.mxu3 }
 0x3f0   :  { %756 = vmatpush.msrb.mxu1 %v729_v44 }
 0x3f2   :  { %757 = vmatpush.msrb.mxu1 %v728_v21  ;;  %v869_v21 = vld [vmem:[%s3072_s1 + $0xa0] sm:$0xff] }
 0x3f3   :  { %986 = vmatpush.msra.mxu0 %v869_v21  ;;  %1596 = vmatpush.msra.mxu3 %v869_v21 }
 0x3f4   :  { %758 = vmatpush.msrb.mxu1 %v727_v14 }
 0x3f6   :  { %759 = vmatpush.msrb.mxu1 %v726_v9  ;;  %v868_v9 = vld [vmem:[%s3072_s1 + $0x98] sm:$0xff] }
 0x3f7   :  { %987 = vmatpush.msra.mxu0 %v868_v9  ;;  %1598 = vmatpush.msra.mxu3 %v868_v9 }
 0x3f8   :  { %760 = vmatpush.msrb.mxu1 %v725_v4 }
 0x3fa   :  { %761 = vmatpush.msrb.mxu1 %v724_v63  ;;  %v867_v63 = vld [vmem:[%s3072_s1 + $0x90] sm:$0xff] }
 0x3fb   :  { %988 = vmatpush.msra.mxu0 %v867_v63  ;;  %1600 = vmatpush.msra.mxu3 %v867_v63 }
 0x3fc   :  { %762 = vmatpush.msrb.mxu1 %v723_v1 }
 0x3fe   :  { %763 = vmatpush.msrb.mxu1 %v722_v36 }
 0x400   :  { %764 = vmatpush.msrb.mxu1 %v721_v40 }
 0x402   :  { %765 = vmatpush.msrb.mxu1 %v720_v11 }
 0x404   :  { %766 = vmatpush.msrb.mxu1 %v719_v8  ;;  %v2367_v8 = vld [vmem:[%s3074_s2] sm:$0xff] }
 0x406   :  { %767 = vmatpush.msrb.mxu1 %v718_v5 }
 0x408   :  { %768 = vmatpush.msrb.mxu1 %v717_v2 }
 0x409   :  { %769 = vmatmul.f32.vlgmr.msrb.gmra.mxu1 %v1609_v53 }
 0x40a   :  { %1585 = vmatpush.msra.mxu1 %v874_v33 }
 0x40c   :  { %1587 = vmatpush.msra.mxu1 %v873_v19 }
 0x40e   :  { %1589 = vmatpush.msra.mxu1 %v872_v15 }
 0x410   :  { %1591 = vmatpush.msra.mxu1 %v871_v7 }
 0x412   :  { %1593 = vmatpush.msra.mxu1 %v870_v20 }
 0x414   :  { %1595 = vmatpush.msra.mxu1 %v869_v21 }
 0x416   :  { %1597 = vmatpush.msra.mxu1 %v868_v9 }
 0x418   :  { %1599 = vmatpush.msra.mxu1 %v867_v63 }
 0x466   :  { %v698_v62 = vpop.f32.mrf.mxu1 }
 0x467   :  { %v699_v50 = vadd.f32 %v698_v62, %v678_v37 }
 0x469   :  { %v773_v0 = vmul.f32 0.00390625, %v699_v50 }
 0x46b   :  { %v775_v10 = vmul.f32 %v773_v0, %v773_v0 }
 0x486   :  { %v770_v51 = vpop.f32.mrf.mxu1 }
 0x487   :  { %v771_v61 = vadd.f32 %v770_v51, %v750_v54 }
 0x489   :  { %v774_v23 = vmul.f32 0.00390625, %v771_v61 }
 0x48b   :  { %v776_v45 = vsub.f32 %v774_v23, %v775_v10 }
 0x48d   :  { %v777_v39 = vmax.f32 %v776_v45, 0.0 }
 0x48f   :  { %v778_v18 = vadd.f32 1e-05, %v777_v39 }
 0x491   :  { %1604 = vrsqrt.f32 %v778_v18  ;;  %vm785_vm5 = vweird.f32 %v778_v18 }
 0x497   :  { %v1605_v52 = vpop.eup %1604 }
 0x498   :  { %v780_v44 = vmul.f32 %v1605_v52, %v778_v18  ;;  %vm786_vm4 = vweird.f32 %v1605_v52 }
 0x499   :  { %vm787_vm6 = vmor %vm785_vm5, %vm786_vm4 }
 0x49a   :  { %v781_v14 = vmul.f32 %v1605_v52, %v780_v44 }
 0x49c   :  { %v782_v4 = vmul.f32 0.5, %v781_v14 }
 0x49e   :  { %v783_v1 = vsub.f32 1.5, %v782_v4 }
 0x4a0   :  { %v784_v36 = vmul.f32 %v1605_v52, %v783_v1 }
 0x4a2   :  { %v788_v40 = vsel %vm787_vm6, %v1605_v52, %v784_v36 }
 0x4a3   :  { %v790_v11 = vrot.slane %v788_v40, 4 }
 0x4a5   :  { %v792_v5 = vmul.f32 %v2367_v8, %v790_v11 }
 0x4a7   :  { %v794_v2 = vrot.slane %v792_v5, 4  ;;  %v2370_v50 = vperm.slane %v792_v5, 4 }
 0x4a9   :  { %v796_v62 = vmul.f32 %v794_v2, %v773_v0  ;;  %v802_v61 = vmul.f32 %v2370_v50, %v2226_v28  ;;  %v804_v10 = vmul.f32 %v2370_v50, %v2216_v34  ;;  %v810_v23 = vmul.f32 %v2370_v50, %v2171_v3 }
 0x4aa   :  { %v803_v0 = vmul.f32 %v2370_v50, %v2221_v22  ;;  %v811_v45 = vmul.f32 %v2370_v50, %v2165_v47  ;;  %v818_v39 = vmul.f32 %v2370_v50, %v2302_v30  ;;  %v819_v18 = vmul.f32 %v2370_v50, %v2299_v26 }
 0x4ab   :  { %v798_v37 = vrot.slane %v796_v62, 3  ;;  %v820_v28 = vmul.f32 %v2370_v50, %v2296_v17  ;;  %v821_v22 = vmul.f32 %v2370_v50, %v2291_v25  ;;  %v822_v47 = vmul.f32 %v2370_v50, %v2286_v31 }
 0x4ac   :  { %v823_v30 = vmul.f32 %v2370_v50, %v2281_v42  ;;  %v824_v26 = vmul.f32 %v2370_v50, %v2277_v29  ;;  %v825_v17 = vmul.f32 %v2370_v50, %v2273_v43  ;;  %v826_v19 = vmul.f32 %v2370_v50, %v2269_v32 }
 0x4ad   :  { %v800_v54 = vsub.f32 %v2367_v8, %v798_v37  ;;  %v827_v15 = vmul.f32 %v2370_v50, %v2265_v16  ;;  %v828_v31 = vmul.f32 %v2370_v50, %v2261_v6  ;;  %v829_v42 = vmul.f32 %v2370_v50, %v2257_v60 }
 0x4ae   :  { %v830_v29 = vmul.f32 %v2370_v50, %v2253_v13  ;;  %v805_v32 = vmul.f32 %v2370_v50, %v2209_v38  ;;  %v831_v16 = vmul.f32 %v2370_v50, %v2249_v49  ;;  %v832_v43 = vmul.f32 %v2370_v50, %v2245_v57 }
 0x4af   :  { %v2373_v51 = vperm.slane %v800_v54, 5  ;;  %v833_v6 = vmul.f32 %v2370_v50, %v2242_v48  ;;  %v806_v11 = vmul.f32 %v2370_v50, %v2200_v35  ;;  %v812_v5 = vmul.f32 %v2370_v50, %v2159_v58 }
 0x4b0   :  { %v807_v37 = vmul.f32 %v2370_v50, %v2193_v41  ;;  %v813_v54 = vmul.f32 %v2370_v50, %v2153_v55  ;;  %v808_v58 = vmul.f32 %v2370_v50, %v2186_v27  ;;  %v809_v55 = vmul.f32 %v2370_v50, %v2179_v12 }
 0x4b1   :  { %v835_v34 = vadd.f32 %v2373_v51, %v802_v61  ;;  %v837_v33 = vadd.f32 %v2373_v51, %v804_v10  ;;  %v843_v3 = vadd.f32 %v2373_v51, %v810_v23  ;;  %v836_v25 = vadd.f32 %v2373_v51, %v803_v0 }
 0x4b2   :  { %v838_v60 = vadd.f32 %v2373_v51, %v805_v32  ;;  %v851_v13 = vadd.f32 %v2373_v51, %v818_v39  ;;  %v852_v7 = vadd.f32 %v2373_v51, %v819_v18  ;;  %v853_v20 = vadd.f32 %v2373_v51, %v820_v28 }
 0x4b3   :  { %1553 = vmatmul.msk.f32.vlgmr.msra.gmra.mxu0 %vm876_vm7, %v835_v34  ;;  %1555 = vmatmul.msk.f32.vlgmr.msra.gmra.mxu1 %vm876_vm7, %v837_v33  ;;  %v854_v38 = vadd.f32 %v2373_v51, %v821_v22  ;;  %v855_v49 = vadd.f32 %v2373_v51, %v822_v47  ;;  %v856_v52 = vadd.f32 %v2373_v51, %v823_v30  ;;  %v2504_v30 = vperm.slane %v2367_v8, 6 }
 0x4b4   :  { %1561 = vmatmul.msk.f32.vlgmr.msra.gmra.mxu3 %vm876_vm7, %v843_v3  ;;  %v857_v57 = vadd.f32 %v2373_v51, %v824_v26  ;;  %v858_v48 = vadd.f32 %v2373_v51, %v825_v17  ;;  %v859_v44 = vadd.f32 %v2373_v51, %v826_v19  ;;  %v860_v21 = vadd.f32 %v2373_v51, %v827_v15 }
 0x4b5   :  { %v861_v14 = vadd.f32 %v2373_v51, %v828_v31  ;;  %v862_v9 = vadd.f32 %v2373_v51, %v829_v42  ;;  %v863_v4 = vadd.f32 %v2373_v51, %v830_v29  ;;  %v864_v63 = vadd.f32 %v2373_v51, %v831_v16 }
 0x4b6   :  { %v865_v1 = vadd.f32 %v2373_v51, %v832_v43  ;;  %v844_v36 = vadd.f32 %v2373_v51, %v811_v45  ;;  %v866_v40 = vadd.f32 %v2373_v51, %v833_v6  ;;  %v839_v2 = vadd.f32 %v2373_v51, %v806_v11 }
 0x4b7   :  { %v845_v62 = vadd.f32 %v2373_v51, %v812_v5  ;;  %v840_v61 = vadd.f32 %v2373_v51, %v807_v37  ;;  %v846_v35 = vadd.f32 %v2373_v51, %v813_v54  ;;  %v814_v10 = vmul.f32 %v2370_v50, %v2145_v24 }
 0x4b8   :  { %v841_v23 = vadd.f32 %v2373_v51, %v808_v58  ;;  %v815_v0 = vmul.f32 %v2370_v50, %v2139_v56  ;;  %v842_v45 = vadd.f32 %v2373_v51, %v809_v55  ;;  %v816_v24 = vmul.f32 %v2370_v50, %v2134_v59 }
 0x4b9   :  { %v847_v41 = vadd.f32 %v2373_v51, %v814_v10  ;;  %v817_v12 = vmul.f32 %v2370_v50, %v2136_v46 }
 0x4ba   :  { %v848_v27 = vadd.f32 %v2373_v51, %v815_v0  ;;  %v849_v39 = vadd.f32 %v2373_v51, %v816_v24 }
 0x4bb   :  { %1554 = vmatmul.msk.f32.gmra.mxu0 %vm876_vm7, %v836_v25  ;;  %1556 = vmatmul.msk.f32.gmra.mxu1 %vm876_vm7, %v838_v60  ;;  %v850_v56 = vadd.f32 %v2373_v51, %v817_v12 }
 0x4bc   :  { %1562 = vmatmul.msk.f32.gmra.mxu3 %vm876_vm7, %v844_v36 }
 0x4c3   :  { %1557 = vmatmul.msk.f32.gmra.mxu1 %vm876_vm7, %v839_v2 }
 0x4c4   :  { %1563 = vmatmul.msk.f32.gmra.mxu3 %vm876_vm7, %v845_v62 }
 0x4cb   :  { %1558 = vmatmul.msk.f32.gmra.mxu1 %vm876_vm7, %v840_v61 }
 0x4cc   :  { %1564 = vmatmul.msk.f32.gmra.mxu3 %vm876_vm7, %v846_v35 }
 0x4d3   :  { %1559 = vmatmul.msk.f32.gmra.mxu1 %vm876_vm7, %v841_v23 }
 0x4d4   :  { %1565 = vmatmul.msk.f32.gmra.mxu3 %vm876_vm7, %v847_v41 }
 0x4db   :  { %1560 = vmatmul.msk.f32.gmra.mxu1 %vm876_vm7, %v842_v45 }
 0x4dc   :  { %1566 = vmatmul.msk.f32.gmra.mxu3 %vm876_vm7, %v848_v27 }
 0x4e4   :  { %1567 = vmatmul.msk.f32.gmra.mxu3 %vm876_vm7, %v849_v39 }
 0x4ec   :  { %1568 = vmatmul.msk.f32.gmra.mxu3 %vm876_vm7, %v850_v56 }
 0x4f4   :  { %1569 = vmatmul.msk.f32.gmra.mxu3 %vm876_vm7, %v851_v13 }
 0x4fc   :  { %1570 = vmatmul.msk.f32.gmra.mxu3 %vm876_vm7, %v852_v7 }
 0x504   :  { %1571 = vmatmul.msk.f32.gmra.mxu3 %vm876_vm7, %v853_v20 }
 0x50c   :  { %1572 = vmatmul.msk.f32.gmra.mxu3 %vm876_vm7, %v854_v38 }
 0x514   :  { %1573 = vmatmul.msk.f32.gmra.mxu3 %vm876_vm7, %v855_v49 }
 0x51c   :  { %1574 = vmatmul.msk.f32.gmra.mxu3 %vm876_vm7, %v856_v52 }
 0x524   :  { %1575 = vmatmul.msk.f32.gmra.mxu3 %vm876_vm7, %v857_v57 }
 0x52c   :  { %1576 = vmatmul.msk.f32.gmra.mxu3 %vm876_vm7, %v858_v48 }
 0x530   :  { %v996_v51 = vpop.f32.mrf.mxu1  ;;  %v990_v52 = vpop.f32.mrf.mxu0 }
 0x531   :  { %v997_v2 = vadd.f32 %v996_v51, %v2504_v30  ;;  %v991_v61 = vadd.f32 %v990_v52, %v2504_v30 }
 0x533   :  { %v2566_v35 = vmax.f32 %v997_v2, 0.0  ;;  %v2572_v23 = vmax.f32 %v991_v61, 0.0 }
 0x534   :  { %1577 = vmatmul.msk.f32.gmra.mxu3 %vm876_vm7, %v859_v44 }
 0x537   :  { %v1014_v59 = vpop.f32.mrf.mxu3 }
 0x538   :  { %v999_v28 = vpop.f32.mrf.mxu1  ;;  %v1015_v38 = vadd.f32 %v1014_v59, %v2504_v30  ;;  %v993_v11 = vpop.f32.mrf.mxu0 }
 0x539   :  { %v1000_v36 = vadd.f32 %v999_v28, %v2504_v30  ;;  %v994_v37 = vadd.f32 %v993_v11, %v2504_v30 }
 0x53b   :  { %v2562_v54 = vmax.f32 %v1000_v36, 0.0  ;;  %v2569_v58 = vmax.f32 %v994_v37, 0.0 }
 0x53c   :  { %1578 = vmatmul.msk.f32.gmra.mxu3 %vm876_vm7, %v860_v21  ;;  %v2539_v21 = vmax.f32 %v1015_v38, 0.0 }
 0x53f   :  { %v1017_v46 = vpop.f32.mrf.mxu3 }
 0x540   :  { %v1002_v33 = vpop.f32.mrf.mxu1  ;;  %v1018_v13 = vadd.f32 %v1017_v46, %v2504_v30 }
 0x542   :  { %v2533_v57 = vmax.f32 %v1018_v13, 0.0 }
 0x544   :  { %1579 = vmatmul.msk.f32.gmra.mxu3 %vm876_vm7, %v861_v14 }
 0x547   :  { %v1020_v50 = vpop.f32.mrf.mxu3 }
 0x548   :  { %v1005_v22 = vpop.f32.mrf.mxu1  ;;  %v1021_v25 = vadd.f32 %v1020_v50, %v2504_v30 }
 0x54a   :  { %v2530_v49 = vmax.f32 %v1021_v25, 0.0 }
 0x54c   :  { %1580 = vmatmul.msk.f32.gmra.mxu3 %vm876_vm7, %v862_v9  ;;  %v1006_v9 = vadd.f32 %v1005_v22, %v2504_v30 }
 0x54f   :  { %v1023_v18 = vpop.f32.mrf.mxu3 }
 0x550   :  { %v1008_v15 = vpop.f32.mrf.mxu1  ;;  %v1024_v16 = vadd.f32 %v1023_v18, %v2504_v30 }
 0x551   :  { %v1009_v14 = vadd.f32 %v1008_v15, %v2504_v30 }
 0x552   :  { %v2526_v7 = vmax.f32 %v1024_v16, 0.0 }
 0x554   :  { %1581 = vmatmul.msk.f32.gmra.mxu3 %vm876_vm7, %v863_v4 }
 0x557   :  { %v1026_v34 = vpop.f32.mrf.mxu3 }
 0x558   :  { %v1027_v29 = vadd.f32 %v1026_v34, %v2504_v30  ;;  %v1011_v20 = vpop.f32.mrf.mxu1 }
 0x559   :  { %v1012_v48 = vadd.f32 %v1011_v20, %v2504_v30 }
 0x55a   :  { %v2522_v60 = vmax.f32 %v1027_v29, 0.0 }
 0x55b   :  { %v2544_v4 = vmax.f32 %v1012_v48, 0.0 }
 0x55c   :  { %1582 = vmatmul.msk.f32.gmra.mxu3 %vm876_vm7, %v864_v63  ;;  %v1003_v63 = vadd.f32 %v1002_v33, %v2504_v30 }
 0x55e   :  { %v2558_v62 = vmax.f32 %v1003_v63, 0.0 }
 0x55f   :  { %v1029_v3 = vpop.f32.mrf.mxu3 }
 0x560   :  { %v1030_v31 = vadd.f32 %v1029_v3, %v2504_v30 }
 0x562   :  { %v2516_v43 = vmax.f32 %v1030_v31, 0.0 }
 0x564   :  { %1583 = vmatmul.msk.f32.gmra.mxu3 %vm876_vm7, %v865_v1  ;;  %v2548_v1 = vmax.f32 %v1009_v14, 0.0 }
 0x567   :  { %v1032_v47 = vpop.f32.mrf.mxu3 }
 0x568   :  { %v1033_v17 = vadd.f32 %v1032_v47, %v2504_v30 }
 0x56a   :  { %v2512_v32 = vmax.f32 %v1033_v17, 0.0 }
 0x56c   :  { %1584 = vmatmul.msk.f32.gmra.mxu3 %vm876_vm7, %v866_v40  ;;  %v2552_v40 = vmax.f32 %v1006_v9, 0.0 }
 0x56f   :  { %v1035_v26 = vpop.f32.mrf.mxu3 }
 0x570   :  { %v1036_v19 = vadd.f32 %v1035_v26, %v2504_v30 }
 0x572   :  { %v2509_v42 = vmax.f32 %v1036_v19, 0.0 }
 0x574   :  { %1118 = vmatpush.msrb.mxu3 %v2509_v42 }
 0x576   :  { %1119 = vmatpush.msrb.mxu3 %v2512_v32 }
 0x577   :  { %v2519_v6 = vpop.f32.mrf.mxu3 }
 0x578   :  { %1120 = vmatpush.msrb.mxu3 %v2516_v43  ;;  %v1039_v61 = vadd.f32 %v2519_v6, %v2504_v30  ;;  %v1171_v6 = vmul.f32 %v2516_v43, %v2516_v43 }
 0x57a   :  { %1121 = vmatpush.msrb.mxu3 %v2522_v60 }
 0x57c   :  { %1122 = vmatpush.msrb.mxu3 %v2526_v7 }
 0x57e   :  { %1123 = vmatpush.msrb.mxu3 %v2530_v49 }
 0x57f   :  { %v2537_v44 = vpop.f32.mrf.mxu3 }
 0x580   :  { %1124 = vmatpush.msrb.mxu3 %v2533_v57  ;;  %v1042_v2 = vadd.f32 %v2537_v44, %v2504_v30  ;;  %v1173_v44 = vmul.f32 %v2509_v42, %v2509_v42 }
 0x582   :  { %1125 = vmatpush.msrb.mxu3 %v2539_v21 }
 0x584   :  { %1126 = vmatpush.msrb.mxu3 %v2544_v4 }
 0x586   :  { %1127 = vmatpush.msrb.mxu3 %v2548_v1 }
 0x587   :  { %v2555_v5 = vpop.f32.mrf.mxu3 }
 0x588   :  { %1128 = vmatpush.msrb.mxu3 %v2552_v40  ;;  %v1045_v36 = vadd.f32 %v2555_v5, %v2504_v30  ;;  %v2640_v5 = vmax.f32 %v1039_v61, 0.0 }
 0x58a   :  { %1129 = vmatpush.msrb.mxu3 %v2558_v62 }
 0x58c   :  { %1130 = vmatpush.msrb.mxu3 %v2562_v54 }
 0x58e   :  { %1131 = vmatpush.msrb.mxu3 %v2566_v35 }
 0x58f   :  { %v1047_v10 = vpop.f32.mrf.mxu3 }
 0x590   :  { %1132 = vmatpush.msrb.mxu3 %v2569_v58  ;;  %v1048_v9 = vadd.f32 %v1047_v10, %v2504_v30  ;;  %v2634_v10 = vmax.f32 %v1045_v36, 0.0 }
 0x592   :  { %1133 = vmatpush.msrb.mxu3 %v2572_v23  ;;  %v2629_v37 = vmax.f32 %v1048_v9, 0.0  ;;  %v1176_v61 = vmul.f32 %v2634_v10, %v2634_v10 }
 0x593   :  { %1134 = vmatmul.f32.vlgmr.msrb.gmra.mxu3 %v1609_v53 }
 0x597   :  { %v1050_v41 = vpop.f32.mrf.mxu3 }
 0x598   :  { %v1051_v48 = vadd.f32 %v1050_v41, %v2504_v30  ;;  %v2637_v41 = vmax.f32 %v1042_v2, 0.0  ;;  %v1177_v2 = vmul.f32 %v2629_v37, %v2629_v37 }
 0x59a   :  { %v2624_v11 = vmax.f32 %v1051_v48, 0.0 }
 0x59c   :  { %v1178_v36 = vmul.f32 %v2624_v11, %v2624_v11 }
 0x59f   :  { %v1053_v55 = vpop.f32.mrf.mxu3 }
 0x5a0   :  { %v1054_v38 = vadd.f32 %v1053_v55, %v2504_v30  ;;  %v1170_v55 = vmul.f32 %v2522_v60, %v2522_v60 }
 0x5a2   :  { %v2619_v63 = vmax.f32 %v1054_v38, 0.0 }
 0x5a4   :  { %v1179_v9 = vmul.f32 %v2619_v63, %v2619_v63 }
 0x5a7   :  { %v1056_v0 = vpop.f32.mrf.mxu3 }
 0x5a8   :  { %v1057_v13 = vadd.f32 %v1056_v0, %v2504_v30  ;;  %v1169_v0 = vmul.f32 %v2526_v7, %v2526_v7 }
 0x5aa   :  { %v2615_v14 = vmax.f32 %v1057_v13, 0.0 }
 0x5ac   :  { %v1180_v48 = vmul.f32 %v2615_v14, %v2615_v14 }
 0x5af   :  { %v1059_v45 = vpop.f32.mrf.mxu3 }
 0x5b0   :  { %v1060_v16 = vadd.f32 %v1059_v45, %v2504_v30  ;;  %v1168_v45 = vmul.f32 %v2530_v49, %v2530_v49 }
 0x5b2   :  { %v2611_v52 = vmax.f32 %v1060_v16, 0.0 }
 0x5b4   :  { %v1181_v38 = vmul.f32 %v2611_v52, %v2611_v52 }
 0x5b7   :  { %v1062_v27 = vpop.f32.mrf.mxu3 }
 0x5b8   :  { %v1063_v31 = vadd.f32 %v1062_v27, %v2504_v30  ;;  %v1167_v27 = vmul.f32 %v2533_v57, %v2533_v57 }
 0x5ba   :  { %v2607_v20 = vmax.f32 %v1063_v31, 0.0 }
 0x5bc   :  { %v1182_v13 = vmul.f32 %v2607_v20, %v2607_v20 }
 0x5bf   :  { %v1065_v24 = vpop.f32.mrf.mxu3 }
 0x5c0   :  { %v1066_v19 = vadd.f32 %v1065_v24, %v2504_v30  ;;  %v1166_v24 = vmul.f32 %v2539_v21, %v2539_v21 }
 0x5c2   :  { %v2603_v25 = vmax.f32 %v1066_v19, 0.0 }
 0x5c4   :  { %v1183_v16 = vmul.f32 %v2603_v25, %v2603_v25 }
 0x5c7   :  { %v1068_v39 = vpop.f32.mrf.mxu3 }
 0x5c8   :  { %v1069_v26 = vadd.f32 %v1068_v39, %v2504_v30  ;;  %v1165_v39 = vmul.f32 %v2544_v4, %v2544_v4 }
 0x5ca   :  { %v2599_v29 = vmax.f32 %v1069_v26, 0.0 }
 0x5cc   :  { %v1184_v31 = vmul.f32 %v2599_v29, %v2599_v29 }
 0x5cf   :  { %v1071_v12 = vpop.f32.mrf.mxu3 }
 0x5d0   :  { %v1072_v22 = vadd.f32 %v1071_v12, %v2504_v30  ;;  %v1164_v12 = vmul.f32 %v2548_v1, %v2548_v1 }
 0x5d2   :  { %v2595_v15 = vmax.f32 %v1072_v22, 0.0 }
 0x5d4   :  { %v1185_v19 = vmul.f32 %v2595_v15, %v2595_v15 }
 0x5d7   :  { %v1074_v56 = vpop.f32.mrf.mxu3 }
 0x5d8   :  { %v1075_v33 = vadd.f32 %v1074_v56, %v2504_v30  ;;  %v1163_v56 = vmul.f32 %v2552_v40, %v2552_v40 }
 0x5da   :  { %v2591_v17 = vmax.f32 %v1075_v33, 0.0 }
 0x5dc   :  { %v1186_v26 = vmul.f32 %v2591_v17, %v2591_v17 }
 0x5df   :  { %v1077_v59 = vpop.f32.mrf.mxu3 }
 0x5e0   :  { %v1078_v28 = vadd.f32 %v1077_v59, %v2504_v30  ;;  %v1162_v59 = vmul.f32 %v2558_v62, %v2558_v62 }
 0x5e2   :  { %v2587_v47 = vmax.f32 %v1078_v28, 0.0 }
 0x5e4   :  { %v1187_v22 = vmul.f32 %v2587_v47, %v2587_v47 }
 0x5e7   :  { %v1080_v46 = vpop.f32.mrf.mxu3 }
 0x5e8   :  { %v1081_v51 = vadd.f32 %v1080_v46, %v2504_v30  ;;  %v1161_v46 = vmul.f32 %v2562_v54, %v2562_v54 }
 0x5ea   :  { %v2583_v3 = vmax.f32 %v1081_v51, 0.0  ;;  %v1159_v51 = vmul.f32 %v2569_v58, %v2569_v58 }
 0x5ec   :  { %v1188_v33 = vmul.f32 %v2583_v3, %v2583_v3 }
 0x5ef   :  { %v1083_v50 = vpop.f32.mrf.mxu3 }
 0x5f0   :  { %v1084_v18 = vadd.f32 %v1083_v50, %v2504_v30  ;;  %v1172_v30 = vmul.f32 %v2512_v32, %v2512_v32  ;;  %v1160_v50 = vmul.f32 %v2566_v35, %v2566_v35 }
 0x5f2   :  { %v2580_v34 = vmax.f32 %v1084_v18, 0.0  ;;  %v1158_v18 = vmul.f32 %v2572_v23, %v2572_v23 }
 0x5f4   :  { %1138 = vmatpush.msrb.mxu1 %v2580_v34  ;;  %v1189_v28 = vmul.f32 %v2580_v34, %v2580_v34 }
 0x5f6   :  { %1139 = vmatpush.msrb.mxu1 %v2583_v3 }
 0x5f8   :  { %1140 = vmatpush.msrb.mxu1 %v2587_v47 }
 0x5fa   :  { %1141 = vmatpush.msrb.mxu1 %v2591_v17 }
 0x5fc   :  { %1142 = vmatpush.msrb.mxu1 %v2595_v15 }
 0x5fe   :  { %1143 = vmatpush.msrb.mxu1 %v2599_v29 }
 0x600   :  { %1144 = vmatpush.msrb.mxu1 %v2603_v25 }
 0x602   :  { %1145 = vmatpush.msrb.mxu1 %v2607_v20 }
 0x604   :  { %1146 = vmatpush.msrb.mxu1 %v2611_v52 }
 0x606   :  { %1147 = vmatpush.msrb.mxu1 %v2615_v14 }
 0x608   :  { %1148 = vmatpush.msrb.mxu1 %v2619_v63 }
 0x60a   :  { %1149 = vmatpush.msrb.mxu1 %v2624_v11 }
 0x60c   :  { %1150 = vmatpush.msrb.mxu1 %v2629_v37 }
 0x60e   :  { %1151 = vmatpush.msrb.mxu1 %v2634_v10 }
 0x610   :  { %1152 = vmatpush.msrb.mxu1 %v2637_v41 }
 0x612   :  { %1153 = vmatpush.msrb.mxu1 %v2640_v5 }
 0x613   :  { %1154 = vmatmul.f32.vlgmr.msrb.gmra.mxu1 %v1609_v53 }
 0x614   :  { %1190 = vmatpush.msra.mxu1 %v1173_v44  ;;  %v1175_v44 = vmul.f32 %v2637_v41, %v2637_v41 }
 0x616   :  { %1191 = vmatpush.msra.mxu1 %v1172_v30  ;;  %v1174_v30 = vmul.f32 %v2640_v5, %v2640_v5 }
 0x618   :  { %1192 = vmatpush.msra.mxu1 %v1171_v6 }
 0x61a   :  { %1193 = vmatpush.msra.mxu1 %v1170_v55 }
 0x61c   :  { %1194 = vmatpush.msra.mxu1 %v1169_v0  ;;  %v1135_v0 = vpop.f32.mrf.mxu3 }
 0x61e   :  { %1195 = vmatpush.msra.mxu1 %v1168_v45 }
 0x620   :  { %1196 = vmatpush.msra.mxu1 %v1167_v27 }
 0x622   :  { %1197 = vmatpush.msra.mxu1 %v1166_v24 }
 0x624   :  { %1198 = vmatpush.msra.mxu1 %v1165_v39 }
 0x626   :  { %1199 = vmatpush.msra.mxu1 %v1164_v12 }
 0x628   :  { %1200 = vmatpush.msra.mxu1 %v1163_v56 }
 0x62a   :  { %1201 = vmatpush.msra.mxu1 %v1162_v59 }
 0x62c   :  { %1202 = vmatpush.msra.mxu1 %v1161_v46 }
 0x62e   :  { %1203 = vmatpush.msra.mxu1 %v1160_v50 }
 0x630   :  { %1204 = vmatpush.msra.mxu1 %v1159_v51 }
 0x632   :  { %1205 = vmatpush.msra.mxu1 %v1158_v18 }
 0x633   :  { %1206 = vmatmul.f32.vlgmr.msra.gmra.mxu1 %v1609_v53 }
 0x634   :  { %1210 = vmatpush.msrb.mxu1 %v1189_v28 }
 0x636   :  { %1211 = vmatpush.msrb.mxu1 %v1188_v33 }
 0x638   :  { %1212 = vmatpush.msrb.mxu1 %v1187_v22 }
 0x63a   :  { %1213 = vmatpush.msrb.mxu1 %v1186_v26 }
 0x63c   :  { %1214 = vmatpush.msrb.mxu1 %v1185_v19 }
 0x63e   :  { %1215 = vmatpush.msrb.mxu1 %v1184_v31 }
 0x640   :  { %1216 = vmatpush.msrb.mxu1 %v1183_v16 }
 0x642   :  { %1217 = vmatpush.msrb.mxu1 %v1182_v13  ;;  %v2715_v13 = vld [vmem:[%s3074_s2 + $0x8] sm:$0xff] }
 0x644   :  { %1218 = vmatpush.msrb.mxu1 %v1181_v38 }
 0x646   :  { %1219 = vmatpush.msrb.mxu1 %v1180_v48 }
 0x648   :  { %1220 = vmatpush.msrb.mxu1 %v1179_v9 }
 0x64a   :  { %1221 = vmatpush.msrb.mxu1 %v1178_v36 }
 0x64c   :  { %1222 = vmatpush.msrb.mxu1 %v1177_v2  ;;  %v2723_v2 = vperm.slane %v2715_v13, 1 }
 0x64e   :  { %1223 = vmatpush.msrb.mxu1 %v1176_v61 }
 0x650   :  { %1224 = vmatpush.msrb.mxu1 %v1175_v44 }
 0x652   :  { %1225 = vmatpush.msrb.mxu1 %v1174_v30 }
 0x653   :  { %1226 = vmatmul.f32.vlgmr.msrb.gmra.mxu1 %v1609_v53 }
 0x690   :  { %v1155_v6 = vpop.f32.mrf.mxu1 }
 0x691   :  { %v1156_v45 = vadd.f32 %v1155_v6, %v1135_v0 }
 0x693   :  { %v1230_v27 = vmul.f32 0.00390625, %v1156_v45 }
 0x695   :  { %v1232_v12 = vmul.f32 %v1230_v27, %v1230_v27 }
 0x6b0   :  { %v1207_v55 = vpop.f32.mrf.mxu1 }
 0x6d0   :  { %v1227_v24 = vpop.f32.mrf.mxu1 }
 0x6d1   :  { %v1228_v39 = vadd.f32 %v1227_v24, %v1207_v55 }
 0x6d3   :  { %v1231_v56 = vmul.f32 0.00390625, %v1228_v39 }
 0x6d5   :  { %v1233_v59 = vsub.f32 %v1231_v56, %v1232_v12 }
 0x6d7   :  { %v1234_v46 = vmax.f32 %v1233_v59, 0.0 }
 0x6d9   :  { %v1235_v50 = vadd.f32 1e-05, %v1234_v46 }
 0x6db   :  { %1606 = vrsqrt.f32 %v1235_v50  ;;  %vm1242_vm9 = vweird.f32 %v1235_v50 }
 0x6e1   :  { %v1607_v51 = vpop.eup %1606 }
 0x6e2   :  { %v1237_v18 = vmul.f32 %v1607_v51, %v1235_v50  ;;  %vm1243_vm8 = vweird.f32 %v1607_v51 }
 0x6e3   :  { %vm1244_vm10 = vmor %vm1242_vm9, %vm1243_vm8 }
 0x6e4   :  { %v1238_v28 = vmul.f32 %v1607_v51, %v1237_v18 }
 0x6e6   :  { %v1239_v33 = vmul.f32 0.5, %v1238_v28 }
 0x6e8   :  { %v1240_v22 = vsub.f32 1.5, %v1239_v33 }
 0x6ea   :  { %v1241_v53 = vmul.f32 %v1607_v51, %v1240_v22 }
 0x6ec   :  { %v1245_v26 = vsel %vm1244_vm10, %v1607_v51, %v1241_v53 }
 0x6ed   :  { %v1247_v19 = vrot.slane %v1245_v26, 1 }
 0x6ef   :  { %v1249_v31 = vmul.f32 %v2367_v8, %v1247_v19 }
 0x6f1   :  { %v1251_v16 = vrot.slane %v1249_v31, 7  ;;  %v2718_v9 = vperm.slane %v1249_v31, 7 }
 0x6f3   :  { %v1253_v38 = vmul.f32 %v1251_v16, %v1230_v27  ;;  %v1258_v61 = vmul.f32 %v2718_v9, %v2566_v35  ;;  %v1260_v8 = vmul.f32 %v2718_v9, %v2558_v62  ;;  %v1256_v44 = vmul.f32 %v2718_v9, %v2572_v23 }
 0x6f4   :  { %v1259_v0 = vmul.f32 %v2718_v9, %v2562_v54  ;;  %v1261_v45 = vmul.f32 %v2718_v9, %v2552_v40  ;;  %v1257_v23 = vmul.f32 %v2718_v9, %v2569_v58  ;;  %v1263_v58 = vmul.f32 %v2718_v9, %v2544_v4 }
 0x6f5   :  { %v1254_v48 = vsub.f32 %v2715_v13, %v1253_v38  ;;  %v1264_v18 = vmul.f32 %v2718_v9, %v2539_v21  ;;  %v1262_v28 = vmul.f32 %v2718_v9, %v2548_v1  ;;  %v1265_v21 = vmul.f32 %v2718_v9, %v2533_v57 }
 0x6f6   :  { %v1266_v1 = vmul.f32 %v2718_v9, %v2530_v49  ;;  %v1267_v31 = vmul.f32 %v2718_v9, %v2526_v7  ;;  %v1280_v16 = vmul.f32 %v2718_v9, %v2607_v20  ;;  %v1281_v38 = vmul.f32 %v2718_v9, %v2603_v25 }
 0x6f7   :  { %v2720_v36 = vperm.slane %v1254_v48, 0  ;;  %v1282_v48 = vmul.f32 %v2718_v9, %v2599_v29  ;;  %v1284_v57 = vmul.f32 %v2718_v9, %v2591_v17  ;;  %v1285_v49 = vmul.f32 %v2718_v9, %v2587_v47 }
 0x6f8   :  { %v1286_v20 = vmul.f32 %v2718_v9, %v2583_v3  ;;  %v1287_v25 = vmul.f32 %v2718_v9, %v2580_v34 }
 0x6f9   :  { %v1293_v30 = vadd.f32 %v2720_v36, %v1260_v8  ;;  %v1291_v6 = vadd.f32 %v2720_v36, %v1258_v61  ;;  %v1289_v55 = vadd.f32 %v2720_v36, %v1256_v44  ;;  %v1294_v12 = vadd.f32 %v2720_v36, %v1261_v45 }
 0x6fa   :  { %v1292_v54 = vadd.f32 %v2720_v36, %v1259_v0  ;;  %v1290_v56 = vadd.f32 %v2720_v36, %v1257_v23  ;;  %v1296_v51 = vadd.f32 %v2720_v36, %v1263_v58  ;;  %v1297_v4 = vadd.f32 %v2720_v36, %v1264_v18 }
 0x6fb   :  { %v1326_v35 = vmul.f32 %v2723_v2, %v1293_v30  ;;  %v1324_v62 = vmul.f32 %v2723_v2, %v1291_v6  ;;  %v1322_v27 = vmul.f32 %v2723_v2, %v1289_v55  ;;  %v1327_v59 = vmul.f32 %v2723_v2, %v1294_v12 }
 0x6fc   :  { %v1325_v46 = vmul.f32 %v2723_v2, %v1292_v54  ;;  %v1323_v50 = vmul.f32 %v2723_v2, %v1290_v56  ;;  %v1329_v26 = vmul.f32 %v2723_v2, %v1296_v51  ;;  %v1295_v19 = vadd.f32 %v2720_v36, %v1262_v28 }
 0x6fd   :  { %v1367_v24 = vsel %vm1354_vm11, %v1326_v35, 0.0  ;;  %v1361_v39 = vsel %vm1354_vm11, %v1324_v62, 0.0  ;;  %v1355_v40 = vsel %vm1354_vm11, %v1322_v27, 0.0  ;;  %v1370_v33 = vsel %vm1354_vm11, %v1327_v59, 0.0 }
 0x6fe   :  { %1368 = vadd.xlane.f32.xlu2 %v1367_v24  ;;  %1362 = vadd.xlane.f32.xlu1 %v1361_v39  ;;  %v1364_v22 = vsel %vm1354_vm11, %v1325_v46, 0.0  ;;  %v1358_v53 = vsel %vm1354_vm11, %v1323_v50, 0.0  ;;  %v1283_v61 = vmul.f32 %v2718_v9, %v2595_v15  ;;  %v1330_v7 = vmul.f32 %v2723_v2, %v1297_v4 }
 0x6ff   :  { %1356 = vadd.xlane.f32.xlu0 %v1355_v40  ;;  %v1376_v8 = vsel %vm1354_vm11, %v1329_v26, 0.0  ;;  %v1328_v29 = vmul.f32 %v2723_v2, %v1295_v19  ;;  %v1300_v15 = vadd.f32 %v2720_v36, %v1267_v31  ;;  %v1299_v44 = vadd.f32 %v2720_v36, %v1266_v1 }
 0x700   :  { %v1315_v17 = vadd.f32 %v2720_v36, %v1282_v48  ;;  %v1314_v47 = vadd.f32 %v2720_v36, %v1281_v38  ;;  %v1298_v30 = vadd.f32 %v2720_v36, %v1265_v21  ;;  %v1313_v6 = vadd.f32 %v2720_v36, %v1280_v16 }
 0x701   :  { %v1318_v3 = vadd.f32 %v2720_v36, %v1285_v49  ;;  %v1317_v34 = vadd.f32 %v2720_v36, %v1284_v57  ;;  %v1379_v55 = vsel %vm1354_vm11, %v1330_v7, 0.0  ;;  %v1316_v35 = vadd.f32 %v2720_v36, %v1283_v61 }
 0x702   :  { %v1348_v0 = vmul.f32 %v2723_v2, %v1315_v17  ;;  %v1347_v45 = vmul.f32 %v2723_v2, %v1314_v47  ;;  %v1373_v62 = vsel %vm1354_vm11, %v1328_v29, 0.0  ;;  %v1346_v23 = vmul.f32 %v2723_v2, %v1313_v6 }
 0x703   :  { %v1351_v27 = vmul.f32 %v2723_v2, %v1318_v3  ;;  %v1350_v24 = vmul.f32 %v2723_v2, %v1317_v34  ;;  %v1349_v54 = vmul.f32 %v2723_v2, %v1316_v35  ;;  %v1320_v40 = vadd.f32 %v2720_v36, %v1287_v25 }
 0x704   :  { %v2807_v39 = vsel %vm1354_vm11, %v1348_v0, 0.0  ;;  %v2810_v12 = vsel %vm1354_vm11, %v1347_v45, 0.0  ;;  %v2815_v56 = vsel %vm1354_vm11, %v1346_v23, 0.0  ;;  %v1319_v46 = vadd.f32 %v2720_v36, %v1286_v20 }
 0x705   :  { %v2818_v58 = vsel %vm1354_vm11, %v1351_v27, 0.0  ;;  %v2821_v59 = vsel %vm1354_vm11, %v1350_v24, 0.0  ;;  %v1333_v50 = vmul.f32 %v2723_v2, %v1300_v15  ;;  %v1332_v51 = vmul.f32 %v2723_v2, %v1299_v44 }
 0x706   :  { %1371 = vadd.xlane.f32.xlu2 %v1370_v33  ;;  %1365 = vadd.xlane.f32.xlu1 %v1364_v22  ;;  %v2827_v18 = vsel %vm1354_vm11, %v1349_v54, 0.0  ;;  %v1353_v28 = vmul.f32 %v2723_v2, %v1320_v40  ;;  %v1331_v33 = vmul.f32 %v2723_v2, %v1298_v30  ;;  %v1352_v22 = vmul.f32 %v2723_v2, %v1319_v46 }
 0x707   :  { %1359 = vadd.xlane.f32.xlu0 %v1358_v53  ;;  %v1269_v4 = vmul.f32 %v2718_v9, %v2516_v43  ;;  %v1270_v53 = vmul.f32 %v2718_v9, %v2512_v32  ;;  %v1268_v19 = vmul.f32 %v2718_v9, %v2522_v60  ;;  %v1388_v1 = vsel %vm1354_vm11, %v1333_v50, 0.0 }
 0x708   :  { %v2837_v26 = vsel %vm1354_vm11, %v1353_v28, 0.0  ;;  %v2842_v21 = vsel %vm1354_vm11, %v1352_v22, 0.0  ;;  %v1385_v31 = vsel %vm1354_vm11, %v1332_v51, 0.0  ;;  %v1382_v32 = vsel %vm1354_vm11, %v1331_v33, 0.0 }
 0x709   :  { %v1303_v16 = vadd.f32 %v2720_v36, %v1270_v53  ;;  %v1302_v43 = vadd.f32 %v2720_v36, %v1269_v4  ;;  %v1301_v38 = vadd.f32 %v2720_v36, %v1268_v19  ;;  %v1272_v57 = vmul.f32 %v2718_v9, %v2640_v5 }
 0x70a   :  { %v1273_v49 = vmul.f32 %v2718_v9, %v2637_v41  ;;  %v1271_v7 = vmul.f32 %v2718_v9, %v2509_v42  ;;  %v1275_v17 = vmul.f32 %v2718_v9, %v2629_v37  ;;  %v1276_v47 = vmul.f32 %v2718_v9, %v2624_v11 }
 0x70b   :  { %v1336_v60 = vmul.f32 %v2723_v2, %v1303_v16  ;;  %v1335_v48 = vmul.f32 %v2723_v2, %v1302_v43  ;;  %v1334_v61 = vmul.f32 %v2723_v2, %v1301_v38  ;;  %v1305_v29 = vadd.f32 %v2720_v36, %v1272_v57 }
 0x70c   :  { %v1304_v5 = vadd.f32 %v2720_v36, %v1271_v7  ;;  %v1274_v30 = vmul.f32 %v2718_v9, %v2634_v10  ;;  %v1309_v34 = vadd.f32 %v2720_v36, %v1276_v47  ;;  %v1278_v35 = vmul.f32 %v2718_v9, %v2615_v14 }
 0x70d   :  { %v1397_v20 = vsel %vm1354_vm11, %v1336_v60, 0.0  ;;  %v1394_v25 = vsel %vm1354_vm11, %v1335_v48, 0.0  ;;  %v1391_v15 = vsel %vm1354_vm11, %v1334_v61, 0.0  ;;  %v1338_v44 = vmul.f32 %v2723_v2, %v1305_v29 }
 0x70e   :  { %1380 = vadd.xlane.f32.xlu2 %v1379_v55  ;;  %1377 = vadd.xlane.f32.xlu1 %v1376_v8  ;;  %v1306_v8 = vadd.f32 %v2720_v36, %v1273_v49  ;;  %v1337_v42 = vmul.f32 %v2723_v2, %v1304_v5  ;;  %v1308_v55 = vadd.f32 %v2720_v36, %v1275_v17 }
 0x70f   :  { %1374 = vadd.xlane.f32.xlu0 %v1373_v62  ;;  %v1403_v3 = vsel %vm1354_vm11, %v1338_v44, 0.0  ;;  %v1307_v37 = vadd.f32 %v2720_v36, %v1274_v30  ;;  %v1342_v11 = vmul.f32 %v2723_v2, %v1309_v34  ;;  %v1279_v62 = vmul.f32 %v2718_v9, %v2611_v52 }
 0x710   :  { %v1339_v41 = vmul.f32 %v2723_v2, %v1306_v8  ;;  %v1400_v0 = vsel %vm1354_vm11, %v1337_v42, 0.0  ;;  %v1341_v45 = vmul.f32 %v2723_v2, %v1308_v55  ;;  %v1277_v23 = vmul.f32 %v2718_v9, %v2619_v63 }
 0x711   :  { %v1340_v10 = vmul.f32 %v2723_v2, %v1307_v37  ;;  %v1415_v27 = vsel %vm1354_vm11, %v1342_v11, 0.0  ;;  %v1312_v54 = vadd.f32 %v2720_v36, %v1279_v62  ;;  %v1311_v40 = vadd.f32 %v2720_v36, %v1278_v35 }
 0x712   :  { %v1406_v6 = vsel %vm1354_vm11, %v1339_v41, 0.0  ;;  %v1412_v24 = vsel %vm1354_vm11, %v1341_v45, 0.0  ;;  %v1310_v14 = vadd.f32 %v2720_v36, %v1277_v23  ;;  %v2910_v36 = vperm.slane %v2715_v13, 2 }
 0x713   :  { %v1409_v46 = vsel %vm1354_vm11, %v1340_v10, 0.0  ;;  %v1345_v52 = vmul.f32 %v2723_v2, %v1312_v54  ;;  %v1344_v50 = vmul.f32 %v2723_v2, %v1311_v40 }
 0x714   :  { %v1343_v63 = vmul.f32 %v2723_v2, %v1310_v14 }
 0x715   :  { %v1424_v9 = vsel %vm1354_vm11, %v1345_v52, 0.0  ;;  %v1421_v51 = vsel %vm1354_vm11, %v1344_v50, 0.0 }
 0x716   :  { %1389 = vadd.xlane.f32.xlu2 %v1388_v1  ;;  %1386 = vadd.xlane.f32.xlu1 %v1385_v31  ;;  %v1418_v28 = vsel %vm1354_vm11, %v1343_v63, 0.0 }
 0x717   :  { %1383 = vadd.xlane.f32.xlu0 %v1382_v32 }
 0x71e   :  { %1398 = vadd.xlane.f32.xlu2 %v1397_v20  ;;  %1395 = vadd.xlane.f32.xlu1 %v1394_v25 }
 0x71f   :  { %1392 = vadd.xlane.f32.xlu0 %v1391_v15 }
 0x726   :  { %1407 = vadd.xlane.f32.xlu2 %v1406_v6  ;;  %1404 = vadd.xlane.f32.xlu1 %v1403_v3 }
 0x727   :  { %1401 = vadd.xlane.f32.xlu0 %v1400_v0 }
 0x72e   :  { %1416 = vadd.xlane.f32.xlu2 %v1415_v27  ;;  %1413 = vadd.xlane.f32.xlu1 %v1412_v24 }
 0x72f   :  { %1410 = vadd.xlane.f32.xlu0 %v1409_v46 }
 0x736   :  { %1425 = vadd.xlane.f32.xlu2 %v1424_v9  ;;  %1422 = vadd.xlane.f32.xlu1 %v1421_v51 }
 0x737   :  { %1419 = vadd.xlane.f32.xlu0 %v1418_v28 }
 0x73e   :  { %1434 = vadd.xlane.f32.xlu2 %v2807_v39  ;;  %1431 = vadd.xlane.f32.xlu1 %v2810_v12 }
 0x73f   :  { %1428 = vadd.xlane.f32.xlu0 %v2815_v56 }
 0x746   :  { %1443 = vadd.xlane.f32.xlu2 %v2818_v58  ;;  %1440 = vadd.xlane.f32.xlu1 %v2821_v59 }
 0x747   :  { %1437 = vadd.xlane.f32.xlu0 %v2827_v18 }
 0x74e   :  { %1449 = vadd.xlane.f32.xlu1 %v2837_v26 }
 0x74f   :  { %1446 = vadd.xlane.f32.xlu0 %v2842_v21 }
 0x771   :  { %v1369_v2 = vpop.xlane.xlu2 %1368  ;;  %v1363_v39 = vpop.xlane.xlu1 %1362 }
 0x772   :  { %v1456_v12 = vadd.f32 %v2910_v36, %v1369_v2  ;;  %v1454_v56 = vadd.f32 %v2910_v36, %v1363_v39  ;;  %v1357_v33 = vpop.xlane.xlu0 %1356 }
 0x773   :  { %v1452_v58 = vadd.f32 %v2910_v36, %v1357_v33 }
 0x774   :  { %1489 = vst.msk [vmem:[%s3075_s3 + $0x20] sm:$0xff] %vm1484_vm12, %v1456_v12 }
 0x775   :  { %1487 = vst.msk [vmem:[%s3075_s3 + $0x10] sm:$0xff] %vm1484_vm12, %v1454_v56 }
 0x776   :  { %1485 = vst.msk [vmem:[%s3075_s3] sm:$0xff] %vm1484_vm12, %v1452_v58 }
 0x779   :  { %v1372_v13 = vpop.xlane.xlu2 %1371  ;;  %v1366_v59 = vpop.xlane.xlu1 %1365 }
 0x77a   :  { %v1457_v18 = vadd.f32 %v2910_v36, %v1372_v13  ;;  %v1455_v22 = vadd.f32 %v2910_v36, %v1366_v59  ;;  %v1360_v4 = vpop.xlane.xlu0 %1359 }
 0x77b   :  { %v1453_v53 = vadd.f32 %v2910_v36, %v1360_v4 }
 0x77c   :  { %1490 = vst.msk [vmem:[%s3075_s3 + $0x28] sm:$0xff] %vm1484_vm12, %v1457_v18 }
 0x77d   :  { %1488 = vst.msk [vmem:[%s3075_s3 + $0x18] sm:$0xff] %vm1484_vm12, %v1455_v22 }
 0x77e   :  { %1486 = vst.msk [vmem:[%s3075_s3 + $0x8] sm:$0xff] %vm1484_vm12, %v1453_v53 }
 0x781   :  { %v1381_v26 = vpop.xlane.xlu2 %1380  ;;  %v1378_v19 = vpop.xlane.xlu1 %1377 }
 0x782   :  { %v1460_v21 = vadd.f32 %v2910_v36, %v1381_v26  ;;  %v1459_v1 = vadd.f32 %v2910_v36, %v1378_v19  ;;  %v1375_v31 = vpop.xlane.xlu0 %1374 }
 0x783   :  { %v1458_v16 = vadd.f32 %v2910_v36, %v1375_v31 }
 0x784   :  { %1493 = vst.msk [vmem:[%s3075_s3 + $0x40] sm:$0xff] %vm1484_vm12, %v1460_v21 }
 0x785   :  { %1492 = vst.msk [vmem:[%s3075_s3 + $0x38] sm:$0xff] %vm1484_vm12, %v1459_v1 }
 0x786   :  { %1491 = vst.msk [vmem:[%s3075_s3 + $0x30] sm:$0xff] %vm1484_vm12, %v1458_v16 }
 0x789   :  { %v1390_v43 = vpop.xlane.xlu2 %1389  ;;  %v1387_v32 = vpop.xlane.xlu1 %1386 }
 0x78a   :  { %v1463_v38 = vadd.f32 %v2910_v36, %v1390_v43  ;;  %v1462_v60 = vadd.f32 %v2910_v36, %v1387_v32  ;;  %v1384_v48 = vpop.xlane.xlu0 %1383 }
 0x78b   :  { %v1461_v61 = vadd.f32 %v2910_v36, %v1384_v48 }
 0x78c   :  { %1496 = vst.msk [vmem:[%s3075_s3 + $0x58] sm:$0xff] %vm1484_vm12, %v1463_v38 }
 0x78d   :  { %1495 = vst.msk [vmem:[%s3075_s3 + $0x50] sm:$0xff] %vm1484_vm12, %v1462_v60 }
 0x78e   :  { %1494 = vst.msk [vmem:[%s3075_s3 + $0x48] sm:$0xff] %vm1484_vm12, %v1461_v61 }
 0x791   :  { %v1399_v57 = vpop.xlane.xlu2 %1398  ;;  %v1396_v49 = vpop.xlane.xlu1 %1395 }
 0x792   :  { %v1466_v7 = vadd.f32 %v2910_v36, %v1399_v57  ;;  %v1465_v20 = vadd.f32 %v2910_v36, %v1396_v49  ;;  %v1393_v25 = vpop.xlane.xlu0 %1392 }
 0x793   :  { %v1464_v8 = vadd.f32 %v2910_v36, %v1393_v25 }
 0x794   :  { %1499 = vst.msk [vmem:[%s3075_s3 + $0x70] sm:$0xff] %vm1484_vm12, %v1466_v7 }
 0x795   :  { %1498 = vst.msk [vmem:[%s3075_s3 + $0x68] sm:$0xff] %vm1484_vm12, %v1465_v20 }
 0x796   :  { %1497 = vst.msk [vmem:[%s3075_s3 + $0x60] sm:$0xff] %vm1484_vm12, %v1464_v8 }
 0x799   :  { %v1408_v29 = vpop.xlane.xlu2 %1407  ;;  %v1405_v15 = vpop.xlane.xlu1 %1404 }
 0x79a   :  { %v1469_v5 = vadd.f32 %v2910_v36, %v1408_v29  ;;  %v1468_v41 = vadd.f32 %v2910_v36, %v1405_v15  ;;  %v1402_v44 = vpop.xlane.xlu0 %1401 }
 0x79b   :  { %v1467_v42 = vadd.f32 %v2910_v36, %v1402_v44 }
 0x79c   :  { %1502 = vst.msk [vmem:[%s3075_s3 + $0x88] sm:$0xff] %vm1484_vm12, %v1469_v5 }
 0x79d   :  { %1501 = vst.msk [vmem:[%s3075_s3 + $0x80] sm:$0xff] %vm1484_vm12, %v1468_v41 }
 0x79e   :  { %1500 = vst.msk [vmem:[%s3075_s3 + $0x78] sm:$0xff] %vm1484_vm12, %v1467_v42 }
 0x7a1   :  { %v1417_v17 = vpop.xlane.xlu2 %1416  ;;  %v1414_v47 = vpop.xlane.xlu1 %1413 }
 0x7a2   :  { %v1472_v30 = vadd.f32 %v2910_v36, %v1417_v17  ;;  %v1471_v6 = vadd.f32 %v2910_v36, %v1414_v47  ;;  %v1411_v3 = vpop.xlane.xlu0 %1410 }
 0x7a3   :  { %v1470_v34 = vadd.f32 %v2910_v36, %v1411_v3 }
 0x7a4   :  { %1505 = vst.msk [vmem:[%s3075_s3 + $0xa0] sm:$0xff] %vm1484_vm12, %v1472_v30 }
 0x7a5   :  { %1504 = vst.msk [vmem:[%s3075_s3 + $0x98] sm:$0xff] %vm1484_vm12, %v1471_v6 }
 0x7a6   :  { %1503 = vst.msk [vmem:[%s3075_s3 + $0x90] sm:$0xff] %vm1484_vm12, %v1470_v34 }
 0x7a9   :  { %v1426_v55 = vpop.xlane.xlu2 %1425  ;;  %v1423_v0 = vpop.xlane.xlu1 %1422 }
 0x7aa   :  { %v1475_v37 = vadd.f32 %v2910_v36, %v1426_v55  ;;  %v1474_v11 = vadd.f32 %v2910_v36, %v1423_v0  ;;  %v1420_v45 = vpop.xlane.xlu0 %1419 }
 0x7ab   :  { %v1473_v10 = vadd.f32 %v2910_v36, %v1420_v45 }
 0x7ac   :  { %1508 = vst.msk [vmem:[%s3075_s3 + $0xb8] sm:$0xff] %vm1484_vm12, %v1475_v37 }
 0x7ad   :  { %1507 = vst.msk [vmem:[%s3075_s3 + $0xb0] sm:$0xff] %vm1484_vm12, %v1474_v11 }
 0x7ae   :  { %1506 = vst.msk [vmem:[%s3075_s3 + $0xa8] sm:$0xff] %vm1484_vm12, %v1473_v10 }
 0x7b1   :  { %v1435_v35 = vpop.xlane.xlu2 %1434  ;;  %v1432_v62 = vpop.xlane.xlu1 %1431 }
 0x7b2   :  { %v1478_v23 = vadd.f32 %v2910_v36, %v1435_v35  ;;  %v1477_v27 = vadd.f32 %v2910_v36, %v1432_v62  ;;  %v1429_v24 = vpop.xlane.xlu0 %1428 }
 0x7b3   :  { %v1476_v54 = vadd.f32 %v2910_v36, %v1429_v24 }
 0x7b4   :  { %1511 = vst.msk [vmem:[%s3075_s3 + $0xd0] sm:$0xff] %vm1484_vm12, %v1478_v23 }
 0x7b5   :  { %1510 = vst.msk [vmem:[%s3075_s3 + $0xc8] sm:$0xff] %vm1484_vm12, %v1477_v27 }
 0x7b6   :  { %1509 = vst.msk [vmem:[%s3075_s3 + $0xc0] sm:$0xff] %vm1484_vm12, %v1476_v54 }
 0x7b9   :  { %v1444_v40 = vpop.xlane.xlu2 %1443  ;;  %v1441_v46 = vpop.xlane.xlu1 %1440 }
 0x7ba   :  { %v1481_v14 = vadd.f32 %v2910_v36, %v1444_v40  ;;  %v1480_v52 = vadd.f32 %v2910_v36, %v1441_v46  ;;  %v1438_v50 = vpop.xlane.xlu0 %1437 }
 0x7bb   :  { %v1479_v63 = vadd.f32 %v2910_v36, %v1438_v50 }
 0x7bc   :  { %1514 = vst.msk [vmem:[%s3075_s3 + $0xe8] sm:$0xff] %vm1484_vm12, %v1481_v14 }
 0x7bd   :  { %1513 = vst.msk [vmem:[%s3075_s3 + $0xe0] sm:$0xff] %vm1484_vm12, %v1480_v52 }
 0x7be   :  { %1512 = vst.msk [vmem:[%s3075_s3 + $0xd8] sm:$0xff] %vm1484_vm12, %v1479_v63 }
 0x7c1   :  { %v1450_v9 = vpop.xlane.xlu1 %1449 }
 0x7c2   :  { %v1483_v51 = vadd.f32 %v2910_v36, %v1450_v9  ;;  %v1447_v28 = vpop.xlane.xlu0 %1446 }
 0x7c3   :  { %v1482_v2 = vadd.f32 %v2910_v36, %v1447_v28 }
 0x7c4   :  { %1516 = vst.msk [vmem:[%s3075_s3 + $0xf8] sm:$0xff] %vm1484_vm12, %v1483_v51 }
 0x7c5   :  { %1515 = vst.msk [vmem:[%s3075_s3 + $0xf0] sm:$0xff] %vm1484_vm12, %v1482_v2 }

</bundles_post_ra>
